<compile_context>
chip_gen: v7x
topology: tpu7x:2x2x1
jax: 0.10.0
libtpu: 0.0.40
codegen_flags: <defaults>
</compile_context>

<pallas_src>
import jax
import jax.numpy as jnp
from jax import lax
from jax.experimental import pallas as pl
from jax.experimental.pallas import tpu as pltpu


def _full_spec(shape):
    return pl.BlockSpec(shape, lambda i, _n=len(shape): (0,) * _n)


# ------------------- fused bidirectional GRU layer kernel -------------------
def _bi_gru_kernel(gx_ref, u_ref, bhn_ref, outf_ref, outb_ref):
    """gx_ref: (T, B, 6H) precomputed input gates, gate-interleaved
         [r_f | r_b | z_f | z_b | n_f | n_b]; bwd columns already time-flipped.
       u_ref:  (2H, 6H) block-diagonal recurrent weights (bf16).
       bhn_ref:(1, 2H)  hidden biases of the n gate [fwd | bwd].
       outf_ref/outb_ref: (T, B, H) per-direction outputs."""
    T, B, _ = gx_ref.shape
    H2 = u_ref.shape[0]          # 2*H
    H = H2 // 2
    u = u_ref[...]               # (2H, 6H) bf16, loaded once
    # hoist the bias broadcast out of the recurrence
    bhn = jnp.broadcast_to(bhn_ref[...], (B, H2))

    def step(t, h):
        gx = gx_ref[t]                                            # (B, 6H) f32
        gh = jnp.dot(h.astype(jnp.bfloat16), u,
                     preferred_element_type=jnp.float32)          # (B, 6H) f32
        r = jax.nn.sigmoid(gx[:, :H2] + gh[:, :H2])
        z = jax.nn.sigmoid(gx[:, H2:2 * H2] + gh[:, H2:2 * H2])
        n = jnp.tanh(gx[:, 2 * H2:] + r * (gh[:, 2 * H2:] + bhn))
        h_new = (1.0 - z) * n + z * h                             # (B, 2H)
        outf_ref[t] = h_new[:, :H]                # fwd hidden at time t
        outb_ref[T - 1 - t] = h_new[:, H:]        # bwd hidden at time T-1-t
        return h_new

    lax.fori_loop(0, T, step, jnp.zeros((B, H2), jnp.float32), unroll=True)


def bi_gru_layer(x, lp):
    """x: (T, B, Din) -> (T, B, 2H). One pallas_call per bidirectional layer."""
    T, B, Din = x.shape
    H = lp["bhn"].shape[1] // 2
    # hoisted input projections (single large matmul per direction, plain XLA)
    xf = x.reshape(T * B, Din)
    gf = (jnp.dot(xf, lp["wx_f"]) + lp["bx_f"]).reshape(T, B, 3 * H)
    gb = (jnp.dot(xf, lp["wx_b"]) + lp["bx_b"]).reshape(T, B, 3 * H)
    gb = jnp.flip(gb, axis=0)                     # bwd recurrence order
    gx = jnp.concatenate(
        [gf[..., 0 * H:1 * H], gb[..., 0 * H:1 * H],
         gf[..., 1 * H:2 * H], gb[..., 1 * H:2 * H],
         gf[..., 2 * H:3 * H], gb[..., 2 * H:3 * H]], axis=-1)    # (T, B, 6H)

    f, b = pl.pallas_call(
        _bi_gru_kernel,
        out_shape=(jax.ShapeDtypeStruct((T, B, H), jnp.float32),
                   jax.ShapeDtypeStruct((T, B, H), jnp.float32)),
        grid_spec=pltpu.PrefetchScalarGridSpec(
            num_scalar_prefetch=0,
            grid=(1,),
            in_specs=[_full_spec((T, B, 6 * H)),
                      _full_spec((2 * H, 6 * H)),
                      _full_spec((1, 2 * H))],
            out_specs=(_full_spec((T, B, H)), _full_spec((T, B, H))),
        ),
        compiler_params=pltpu.CompilerParams(dimension_semantics=("arbitrary",)),
    )(gx, lp["u_blk"].astype(jnp.bfloat16), lp["bhn"])
    return jnp.concatenate([f, b], axis=-1)


# -------- MatchingAttention('general2') + classifier head, single step -------
def _attn_head_kernel(e_ref, mask_ref, wt_ref, bt_ref, wl_ref, bl_ref,
                      wf_ref, bf_ref, logp_ref, alpha_ref):
    E = e_ref[...]                    # (B, T, D) f32 emotions, batch-major
    mask = mask_ref[...]              # (B, T)
    B, T, D = E.shape
    C = wf_ref.shape[1]
    Eb = E.astype(jnp.bfloat16)

    # transform(x) for all T queries at once: (B*T, D) @ (D, D)
    xt = (jnp.dot(E.reshape(B * T, D).astype(jnp.bfloat16), wt_ref[...],
                  preferred_element_type=jnp.float32)
          + bt_ref[...]).reshape(B, T, D)

    # scores against the masked memory, then masked again (matches PyTorch)
    em = (E * mask[:, :, None]).astype(jnp.bfloat16)
    scores = jnp.einsum("bqd,bkd->bqk", xt.astype(jnp.bfloat16), em,
                        preferred_element_type=jnp.float32) * mask[:, None, :]
    a = jnp.tanh(scores)
    a = a - jnp.max(a, axis=-1, keepdims=True)
    ex = jnp.exp(a)
    sm = ex * pl.reciprocal(jnp.sum(ex, axis=-1, keepdims=True), approx=True)
    am = sm * mask[:, None, :]
    # NOTE: matches PyTorch exactly — a batch row with an all-zero umask
    # produces NaN here (division by zero), same as the reference module.
    alpha = am * pl.reciprocal(jnp.sum(am, axis=-1, keepdims=True), approx=True)
    alpha_ref[...] = alpha

    # attn_pool uses the *unmasked* memory (torch.bmm(alpha, M.transpose(0,1)))
    pool = jnp.einsum("bqk,bkd->bqd", alpha.astype(jnp.bfloat16), Eb,
                      preferred_element_type=jnp.float32).reshape(B * T, D)
    hid = jnp.maximum(
        jnp.dot(pool.astype(jnp.bfloat16), wl_ref[...],
                preferred_element_type=jnp.float32) + bl_ref[...], 0.0)
    logits = jnp.dot(hid.astype(jnp.bfloat16), wf_ref[...],
                     preferred_element_type=jnp.float32) + bf_ref[...]
    m = jnp.max(logits, axis=-1, keepdims=True)
    lse = m + jnp.log(jnp.sum(jnp.exp(logits - m), axis=-1, keepdims=True))
    logp_ref[...] = (logits - lse).reshape(B, T, C)


def attention_head(emotions, umask, wt, bt, wl, bl, wf, bf):
    """emotions: (T, B, D); umask: (B, T) -> log_prob (T,B,C), alpha (T,B,T)."""
    T, B, D = emotions.shape
    Dh = wl.shape[1]
    C = wf.shape[1]
    e_btd = jnp.transpose(emotions, (1, 0, 2))        # (B, T, D)
    # TODO(synk): for production-size T, block the key/seq axis instead of
    # keeping the full (B,T,D) memory and (B,T,T) alpha resident in VMEM
    # (v7x only has 64 MiB of VMEM).
    logp, alpha = pl.pallas_call(
        _attn_head_kernel,
        out_shape=(jax.ShapeDtypeStruct((B, T, C), jnp.float32),
                   jax.ShapeDtypeStruct((B, T, T), jnp.float32)),
        grid_spec=pltpu.PrefetchScalarGridSpec(
            num_scalar_prefetch=0,
            grid=(1,),
            in_specs=[_full_spec((B, T, D)), _full_spec((B, T)),
                      _full_spec((D, D)), _full_spec((1, D)),
                      _full_spec((D, Dh)), _full_spec((1, Dh)),
                      _full_spec((Dh, C)), _full_spec((1, C))],
            out_specs=(_full_spec((B, T, C)), _full_spec((B, T, T))),
        ),
        compiler_params=pltpu.CompilerParams(dimension_semantics=("arbitrary",)),
    )(e_btd, umask, wt.astype(jnp.bfloat16), bt, wl.astype(jnp.bfloat16), bl,
      wf.astype(jnp.bfloat16), bf)
    return jnp.transpose(logp, (1, 0, 2)), jnp.transpose(alpha, (1, 0, 2))


# ------------------------------- parameters ----------------------------------
def init_params(key, D_m, D_e, D_h, C):
    """PyTorch-style init, stored in the fused layouts the kernels consume."""
    H = D_e
    D = 2 * D_e
    ks = iter(jax.random.split(key, 24))

    def u(shape, scale):
        return jax.random.uniform(next(ks), shape, jnp.float32, -scale, scale)

    def gru_dir(in_dim):
        s = 1.0 / (H ** 0.5)
        # PyTorch gate order is [r, z, n]
        return (u((3 * H, in_dim), s), u((3 * H, H), s),
                u((3 * H,), s), u((3 * H,), s))

    def fuse_bidir(fwd, bwd):
        def xside(W_ih, b_ih, b_hh):
            wx = W_ih.T                                       # (Din, 3H) [r|z|n]
            # fold b_ir+b_hr, b_iz+b_hz and b_in into the input projection
            bx = jnp.concatenate(
                [b_ih[:2 * H] + b_hh[:2 * H], b_ih[2 * H:]]).reshape(1, 3 * H)
            return wx, bx

        wxf, bxf = xside(fwd[0], fwd[2], fwd[3])
        wxb, bxb = xside(bwd[0], bwd[2], bwd[3])
        Uf, Ub = fwd[1].T, bwd[1].T                           # (H, 3H) each

        def gate_block(g):   # block-diag [fwd, bwd] for one gate -> (2H, 2H)
            z = jnp.zeros((H, H), jnp.float32)
            top = jnp.concatenate([Uf[:, g * H:(g + 1) * H], z], axis=1)
            bot = jnp.concatenate([z, Ub[:, g * H:(g + 1) * H]], axis=1)
            return jnp.concatenate([top, bot], axis=0)

        u_blk = jnp.concatenate([gate_block(0), gate_block(1), gate_block(2)],
                                axis=1)                       # (2H, 6H)
        bhn = jnp.concatenate([fwd[3][2 * H:], bwd[3][2 * H:]]).reshape(1, 2 * H)
        return dict(wx_f=wxf, bx_f=bxf, wx_b=wxb, bx_b=bxb,
                    u_blk=u_blk, bhn=bhn)

    p = {
        "l0": fuse_bidir(gru_dir(D_m), gru_dir(D_m)),
        "l1": fuse_bidir(gru_dir(D), gru_dir(D)),
        # stored pre-transposed so kernels compute x @ W + b
        "wt": u((D, D), 1.0 / (D ** 0.5)), "bt": u((1, D), 1.0 / (D ** 0.5)),
        "wl": u((D, D_h), 1.0 / (D ** 0.5)), "bl": u((1, D_h), 1.0 / (D ** 0.5)),
        "wf": u((D_h, C), 1.0 / (D_h ** 0.5)), "bf": u((1, C), 1.0 / (D_h ** 0.5)),
    }
    return p


# --------------------------------- forward -----------------------------------
def gru_model_forward(U, qmask, umask, params, att2=True):
    """Mirrors GRUModel.forward. qmask is accepted but unused (as in PyTorch)."""
    del qmask
    h1 = bi_gru_layer(U, params["l0"])          # bidirectional layer 0
    # TODO(synk): inter-layer GRU dropout and self.dropout are identity (eval).
    emotions = bi_gru_layer(h1, params["l1"])   # bidirectional layer 1 (T,B,2De)

    if att2:
        log_prob, alpha = attention_head(
            emotions, umask,
            params["wt"], params["bt"], params["wl"], params["bl"],
            params["wf"], params["bf"])
    else:
        hid = jax.nn.relu(emotions @ params["wl"] + params["bl"])
        logits = hid @ params["wf"] + params["bf"]
        log_prob = jax.nn.log_softmax(logits, axis=2)
        alpha = []

    alpha_f, alpha_b = [], []
    return log_prob, alpha, alpha_f, alpha_b, emotions


# ----------------------------------- main -------------------------------------
if __name__ == "__main__":
    T, B = 8, 4
    D_m, D_e, D_h, n_classes = 64, 32, 32, 7

    key = jax.random.PRNGKey(0)
    k_u, k_q, k_p = jax.random.split(key, 3)

    U = jax.random.normal(k_u, (T, B, D_m), jnp.float32)       # (seq, batch, D_m)
    qmask = jax.random.uniform(k_q, (T, B, 2), jnp.float32)    # unused in forward
    umask = jnp.ones((B, T), jnp.float32).at[1, 6:].set(0.0)   # (batch, seq)

    params = init_params(k_p, D_m, D_e, D_h, n_classes)

    forward = jax.jit(
        lambda u_, q_, m_, p_: gru_model_forward(u_, q_, m_, p_, att2=True))
    log_prob, alpha, alpha_f, alpha_b, emotions = forward(U, qmask, umask, params)

    jax.block_until_ready((log_prob, alpha, emotions))

    assert log_prob.shape == (T, B, n_classes)
    assert alpha.shape == (T, B, T)
    assert emotions.shape == (T, B, 2 * D_e)
    print("KERNEL_OK")
</pallas_src>

<mosaic_0001>
module attributes {stable_mosaic.version = 11 : i64} {
  func.func @_bi_gru_kernel(%arg0: i32, %arg1: memref<8x4x192xf32, #tpu.memory_space<vmem>>, %arg2: memref<64x192xbf16, #tpu.memory_space<vmem>>, %arg3: memref<1x64xf32, #tpu.memory_space<vmem>>, %arg4: memref<8x4x32xf32, #tpu.memory_space<vmem>>, %arg5: memref<8x4x32xf32, #tpu.memory_space<vmem>>) attributes {dimension_semantics = [#tpu.dimension_semantics<arbitrary>], iteration_bounds = array<i64: 1>, scalar_prefetch = 0 : i64, scratch_operands = 0 : i64, tpu.core_type = #tpu.core_type<tc>, window_params = [{pipeline_mode = #tpu.pipeline_mode<synchronous>, transform_indices = @transform_0, window_bounds = array<i64: 8, 4, 192>}, {pipeline_mode = #tpu.pipeline_mode<synchronous>, transform_indices = @transform_1, window_bounds = array<i64: 64, 192>}, {pipeline_mode = #tpu.pipeline_mode<synchronous>, transform_indices = @transform_2, window_bounds = array<i64: 1, 64>}, {pipeline_mode = #tpu.pipeline_mode<synchronous>, transform_indices = @transform_3, window_bounds = array<i64: 8, 4, 32>}, {pipeline_mode = #tpu.pipeline_mode<synchronous>, transform_indices = @transform_4, window_bounds = array<i64: 8, 4, 32>}]} {
    %c0 = arith.constant 0 : index
    %c0_0 = arith.constant 0 : index
    %0 = vector.load %arg2[%c0, %c0_0] : memref<64x192xbf16, #tpu.memory_space<vmem>>, vector<64x192xbf16>
    %c0_1 = arith.constant 0 : index
    %c0_2 = arith.constant 0 : index
    %1 = vector.load %arg3[%c0_1, %c0_2] : memref<1x64xf32, #tpu.memory_space<vmem>>, vector<1x64xf32>
    %2 = vector.shape_cast %1 : vector<1x64xf32> to vector<1x64xf32>
    %3 = vector.broadcast %2 : vector<1x64xf32> to vector<4x64xf32>
    %cst = arith.constant 0.000000e+00 : f32
    %4 = vector.broadcast %cst : f32 to vector<4x64xf32>
    %c0_i32 = arith.constant 0 : i32
    %5 = arith.index_cast %c0_i32 : i32 to index
    %c0_3 = arith.constant 0 : index
    %c0_4 = arith.constant 0 : index
    %6 = vector.load %arg1[%5, %c0_3, %c0_4] : memref<8x4x192xf32, #tpu.memory_space<vmem>>, vector<1x4x192xf32>
    %7 = vector.shape_cast %6 : vector<1x4x192xf32> to vector<4x192xf32>
    %8 = arith.truncf %4 : vector<4x64xf32> to vector<4x64xbf16>
    %cst_5 = arith.constant dense<0.000000e+00> : vector<4x192xf32>
    %9 = tpu.matmul %8, %0, %cst_5 {dimension_numbers = #tpu.dot_dimension_numbers<[1], [0], [0], [1], [0, 0, 1, 1], [], []>} : vector<4x64xbf16>, vector<64x192xbf16>, vector<4x192xf32> -> vector<4x192xf32>
    %10 = vector.extract_strided_slice %7 {offsets = [0, 0], sizes = [4, 64], strides = [1, 1]} : vector<4x192xf32> to vector<4x64xf32>
    %11 = vector.extract_strided_slice %9 {offsets = [0, 0], sizes = [4, 64], strides = [1, 1]} : vector<4x192xf32> to vector<4x64xf32>
    %12 = arith.addf %10, %11 : vector<4x64xf32>
    %13 = arith.negf %12 : vector<4x64xf32>
    %14 = math.exp %13 : vector<4x64xf32>
    %cst_6 = arith.constant 1.000000e+00 : f32
    %15 = vector.broadcast %cst_6 : f32 to vector<4x64xf32>
    %16 = arith.addf %15, %14 : vector<4x64xf32>
    %17 = arith.divf %15, %16 : vector<4x64xf32>
    %18 = vector.extract_strided_slice %7 {offsets = [0, 64], sizes = [4, 64], strides = [1, 1]} : vector<4x192xf32> to vector<4x64xf32>
    %19 = vector.extract_strided_slice %9 {offsets = [0, 64], sizes = [4, 64], strides = [1, 1]} : vector<4x192xf32> to vector<4x64xf32>
    %20 = arith.addf %18, %19 : vector<4x64xf32>
    %21 = arith.negf %20 : vector<4x64xf32>
    %22 = math.exp %21 : vector<4x64xf32>
    %cst_7 = arith.constant 1.000000e+00 : f32
    %23 = vector.broadcast %cst_7 : f32 to vector<4x64xf32>
    %24 = arith.addf %23, %22 : vector<4x64xf32>
    %25 = arith.divf %23, %24 : vector<4x64xf32>
    %26 = vector.extract_strided_slice %7 {offsets = [0, 128], sizes = [4, 64], strides = [1, 1]} : vector<4x192xf32> to vector<4x64xf32>
    %27 = vector.extract_strided_slice %9 {offsets = [0, 128], sizes = [4, 64], strides = [1, 1]} : vector<4x192xf32> to vector<4x64xf32>
    %28 = arith.addf %27, %3 : vector<4x64xf32>
    %29 = arith.mulf %17, %28 : vector<4x64xf32>
    %30 = arith.addf %26, %29 : vector<4x64xf32>
    %31 = math.tanh %30 : vector<4x64xf32>
    %cst_8 = arith.constant 1.000000e+00 : f32
    %32 = vector.broadcast %cst_8 : f32 to vector<4x64xf32>
    %33 = arith.subf %32, %25 : vector<4x64xf32>
    %34 = arith.mulf %33, %31 : vector<4x64xf32>
    %35 = arith.mulf %25, %4 : vector<4x64xf32>
    %36 = arith.addf %34, %35 : vector<4x64xf32>
    %37 = vector.extract_strided_slice %36 {offsets = [0, 0], sizes = [4, 32], strides = [1, 1]} : vector<4x64xf32> to vector<4x32xf32>
    %38 = arith.index_cast %c0_i32 : i32 to index
    %c0_9 = arith.constant 0 : index
    %c0_10 = arith.constant 0 : index
    %39 = vector.load %arg4[%38, %c0_9, %c0_10] : memref<8x4x32xf32, #tpu.memory_space<vmem>>, vector<1x4x32xf32>
    %40 = vector.shape_cast %39 : vector<1x4x32xf32> to vector<4x32xf32>
    %41 = vector.shape_cast %37 : vector<4x32xf32> to vector<1x4x32xf32>
    tpu.vector_store %arg4[%38, %c0_9, %c0_10], %41 {strides = array<i32>} : memref<8x4x32xf32, #tpu.memory_space<vmem>>, vector<1x4x32xf32>,
    %42 = vector.extract_strided_slice %36 {offsets = [0, 32], sizes = [4, 32], strides = [1, 1]} : vector<4x64xf32> to vector<4x32xf32>
    %c7_i32 = arith.constant 7 : i32
    %43 = arith.subi %c7_i32, %c0_i32 : i32
    %44 = arith.index_cast %43 : i32 to index
    %c0_11 = arith.constant 0 : index
    %c0_12 = arith.constant 0 : index
    %45 = vector.load %arg5[%44, %c0_11, %c0_12] : memref<8x4x32xf32, #tpu.memory_space<vmem>>, vector<1x4x32xf32>
    %46 = vector.shape_cast %45 : vector<1x4x32xf32> to vector<4x32xf32>
    %47 = vector.shape_cast %42 : vector<4x32xf32> to vector<1x4x32xf32>
    tpu.vector_store %arg5[%44, %c0_11, %c0_12], %47 {strides = array<i32>} : memref<8x4x32xf32, #tpu.memory_space<vmem>>, vector<1x4x32xf32>,
    %c1_i32 = arith.constant 1 : i32
    %48 = arith.index_cast %c1_i32 : i32 to index
    %c0_13 = arith.constant 0 : index
    %c0_14 = arith.constant 0 : index
    %49 = vector.load %arg1[%48, %c0_13, %c0_14] : memref<8x4x192xf32, #tpu.memory_space<vmem>>, vector<1x4x192xf32>
    %50 = vector.shape_cast %49 : vector<1x4x192xf32> to vector<4x192xf32>
    %51 = arith.truncf %36 : vector<4x64xf32> to vector<4x64xbf16>
    %cst_15 = arith.constant dense<0.000000e+00> : vector<4x192xf32>
    %52 = tpu.matmul %51, %0, %cst_15 {dimension_numbers = #tpu.dot_dimension_numbers<[1], [0], [0], [1], [0, 0, 1, 1], [], []>} : vector<4x64xbf16>, vector<64x192xbf16>, vector<4x192xf32> -> vector<4x192xf32>
    %53 = vector.extract_strided_slice %50 {offsets = [0, 0], sizes = [4, 64], strides = [1, 1]} : vector<4x192xf32> to vector<4x64xf32>
    %54 = vector.extract_strided_slice %52 {offsets = [0, 0], sizes = [4, 64], strides = [1, 1]} : vector<4x192xf32> to vector<4x64xf32>
    %55 = arith.addf %53, %54 : vector<4x64xf32>
    %56 = arith.negf %55 : vector<4x64xf32>
    %57 = math.exp %56 : vector<4x64xf32>
    %cst_16 = arith.constant 1.000000e+00 : f32
    %58 = vector.broadcast %cst_16 : f32 to vector<4x64xf32>
    %59 = arith.addf %58, %57 : vector<4x64xf32>
    %60 = arith.divf %58, %59 : vector<4x64xf32>
    %61 = vector.extract_strided_slice %50 {offsets = [0, 64], sizes = [4, 64], strides = [1, 1]} : vector<4x192xf32> to vector<4x64xf32>
    %62 = vector.extract_strided_slice %52 {offsets = [0, 64], sizes = [4, 64], strides = [1, 1]} : vector<4x192xf32> to vector<4x64xf32>
    %63 = arith.addf %61, %62 : vector<4x64xf32>
    %64 = arith.negf %63 : vector<4x64xf32>
    %65 = math.exp %64 : vector<4x64xf32>
    %cst_17 = arith.constant 1.000000e+00 : f32
    %66 = vector.broadcast %cst_17 : f32 to vector<4x64xf32>
    %67 = arith.addf %66, %65 : vector<4x64xf32>
    %68 = arith.divf %66, %67 : vector<4x64xf32>
    %69 = vector.extract_strided_slice %50 {offsets = [0, 128], sizes = [4, 64], strides = [1, 1]} : vector<4x192xf32> to vector<4x64xf32>
    %70 = vector.extract_strided_slice %52 {offsets = [0, 128], sizes = [4, 64], strides = [1, 1]} : vector<4x192xf32> to vector<4x64xf32>
    %71 = arith.addf %70, %3 : vector<4x64xf32>
    %72 = arith.mulf %60, %71 : vector<4x64xf32>
    %73 = arith.addf %69, %72 : vector<4x64xf32>
    %74 = math.tanh %73 : vector<4x64xf32>
    %cst_18 = arith.constant 1.000000e+00 : f32
    %75 = vector.broadcast %cst_18 : f32 to vector<4x64xf32>
    %76 = arith.subf %75, %68 : vector<4x64xf32>
    %77 = arith.mulf %76, %74 : vector<4x64xf32>
    %78 = arith.mulf %68, %36 : vector<4x64xf32>
    %79 = arith.addf %77, %78 : vector<4x64xf32>
    %80 = vector.extract_strided_slice %79 {offsets = [0, 0], sizes = [4, 32], strides = [1, 1]} : vector<4x64xf32> to vector<4x32xf32>
    %81 = arith.index_cast %c1_i32 : i32 to index
    %c0_19 = arith.constant 0 : index
    %c0_20 = arith.constant 0 : index
    %82 = vector.load %arg4[%81, %c0_19, %c0_20] : memref<8x4x32xf32, #tpu.memory_space<vmem>>, vector<1x4x32xf32>
    %83 = vector.shape_cast %82 : vector<1x4x32xf32> to vector<4x32xf32>
    %84 = vector.shape_cast %80 : vector<4x32xf32> to vector<1x4x32xf32>
    tpu.vector_store %arg4[%81, %c0_19, %c0_20], %84 {strides = array<i32>} : memref<8x4x32xf32, #tpu.memory_space<vmem>>, vector<1x4x32xf32>,
    %85 = vector.extract_strided_slice %79 {offsets = [0, 32], sizes = [4, 32], strides = [1, 1]} : vector<4x64xf32> to vector<4x32xf32>
    %c7_i32_21 = arith.constant 7 : i32
    %86 = arith.subi %c7_i32_21, %c1_i32 : i32
    %87 = arith.index_cast %86 : i32 to index
    %c0_22 = arith.constant 0 : index
    %c0_23 = arith.constant 0 : index
    %88 = vector.load %arg5[%87, %c0_22, %c0_23] : memref<8x4x32xf32, #tpu.memory_space<vmem>>, vector<1x4x32xf32>
    %89 = vector.shape_cast %88 : vector<1x4x32xf32> to vector<4x32xf32>
    %90 = vector.shape_cast %85 : vector<4x32xf32> to vector<1x4x32xf32>
    tpu.vector_store %arg5[%87, %c0_22, %c0_23], %90 {strides = array<i32>} : memref<8x4x32xf32, #tpu.memory_space<vmem>>, vector<1x4x32xf32>,
    %c2_i32 = arith.constant 2 : i32
    %91 = arith.index_cast %c2_i32 : i32 to index
    %c0_24 = arith.constant 0 : index
    %c0_25 = arith.constant 0 : index
    %92 = vector.load %arg1[%91, %c0_24, %c0_25] : memref<8x4x192xf32, #tpu.memory_space<vmem>>, vector<1x4x192xf32>
    %93 = vector.shape_cast %92 : vector<1x4x192xf32> to vector<4x192xf32>
    %94 = arith.truncf %79 : vector<4x64xf32> to vector<4x64xbf16>
    %cst_26 = arith.constant dense<0.000000e+00> : vector<4x192xf32>
    %95 = tpu.matmul %94, %0, %cst_26 {dimension_numbers = #tpu.dot_dimension_numbers<[1], [0], [0], [1], [0, 0, 1, 1], [], []>} : vector<4x64xbf16>, vector<64x192xbf16>, vector<4x192xf32> -> vector<4x192xf32>
    %96 = vector.extract_strided_slice %93 {offsets = [0, 0], sizes = [4, 64], strides = [1, 1]} : vector<4x192xf32> to vector<4x64xf32>
    %97 = vector.extract_strided_slice %95 {offsets = [0, 0], sizes = [4, 64], strides = [1, 1]} : vector<4x192xf32> to vector<4x64xf32>
    %98 = arith.addf %96, %97 : vector<4x64xf32>
    %99 = arith.negf %98 : vector<4x64xf32>
    %100 = math.exp %99 : vector<4x64xf32>
    %cst_27 = arith.constant 1.000000e+00 : f32
    %101 = vector.broadcast %cst_27 : f32 to vector<4x64xf32>
    %102 = arith.addf %101, %100 : vector<4x64xf32>
    %103 = arith.divf %101, %102 : vector<4x64xf32>
    %104 = vector.extract_strided_slice %93 {offsets = [0, 64], sizes = [4, 64], strides = [1, 1]} : vector<4x192xf32> to vector<4x64xf32>
    %105 = vector.extract_strided_slice %95 {offsets = [0, 64], sizes = [4, 64], strides = [1, 1]} : vector<4x192xf32> to vector<4x64xf32>
    %106 = arith.addf %104, %105 : vector<4x64xf32>
    %107 = arith.negf %106 : vector<4x64xf32>
    %108 = math.exp %107 : vector<4x64xf32>
    %cst_28 = arith.constant 1.000000e+00 : f32
    %109 = vector.broadcast %cst_28 : f32 to vector<4x64xf32>
    %110 = arith.addf %109, %108 : vector<4x64xf32>
    %111 = arith.divf %109, %110 : vector<4x64xf32>
    %112 = vector.extract_strided_slice %93 {offsets = [0, 128], sizes = [4, 64], strides = [1, 1]} : vector<4x192xf32> to vector<4x64xf32>
    %113 = vector.extract_strided_slice %95 {offsets = [0, 128], sizes = [4, 64], strides = [1, 1]} : vector<4x192xf32> to vector<4x64xf32>
    %114 = arith.addf %113, %3 : vector<4x64xf32>
    %115 = arith.mulf %103, %114 : vector<4x64xf32>
    %116 = arith.addf %112, %115 : vector<4x64xf32>
    %117 = math.tanh %116 : vector<4x64xf32>
    %cst_29 = arith.constant 1.000000e+00 : f32
    %118 = vector.broadcast %cst_29 : f32 to vector<4x64xf32>
    %119 = arith.subf %118, %111 : vector<4x64xf32>
    %120 = arith.mulf %119, %117 : vector<4x64xf32>
    %121 = arith.mulf %111, %79 : vector<4x64xf32>
    %122 = arith.addf %120, %121 : vector<4x64xf32>
    %123 = vector.extract_strided_slice %122 {offsets = [0, 0], sizes = [4, 32], strides = [1, 1]} : vector<4x64xf32> to vector<4x32xf32>
    %124 = arith.index_cast %c2_i32 : i32 to index
    %c0_30 = arith.constant 0 : index
    %c0_31 = arith.constant 0 : index
    %125 = vector.load %arg4[%124, %c0_30, %c0_31] : memref<8x4x32xf32, #tpu.memory_space<vmem>>, vector<1x4x32xf32>
    %126 = vector.shape_cast %125 : vector<1x4x32xf32> to vector<4x32xf32>
    %127 = vector.shape_cast %123 : vector<4x32xf32> to vector<1x4x32xf32>
    tpu.vector_store %arg4[%124, %c0_30, %c0_31], %127 {strides = array<i32>} : memref<8x4x32xf32, #tpu.memory_space<vmem>>, vector<1x4x32xf32>,
    %128 = vector.extract_strided_slice %122 {offsets = [0, 32], sizes = [4, 32], strides = [1, 1]} : vector<4x64xf32> to vector<4x32xf32>
    %c7_i32_32 = arith.constant 7 : i32
    %129 = arith.subi %c7_i32_32, %c2_i32 : i32
    %130 = arith.index_cast %129 : i32 to index
    %c0_33 = arith.constant 0 : index
    %c0_34 = arith.constant 0 : index
    %131 = vector.load %arg5[%130, %c0_33, %c0_34] : memref<8x4x32xf32, #tpu.memory_space<vmem>>, vector<1x4x32xf32>
    %132 = vector.shape_cast %131 : vector<1x4x32xf32> to vector<4x32xf32>
    %133 = vector.shape_cast %128 : vector<4x32xf32> to vector<1x4x32xf32>
    tpu.vector_store %arg5[%130, %c0_33, %c0_34], %133 {strides = array<i32>} : memref<8x4x32xf32, #tpu.memory_space<vmem>>, vector<1x4x32xf32>,
    %c3_i32 = arith.constant 3 : i32
    %134 = arith.index_cast %c3_i32 : i32 to index
    %c0_35 = arith.constant 0 : index
    %c0_36 = arith.constant 0 : index
    %135 = vector.load %arg1[%134, %c0_35, %c0_36] : memref<8x4x192xf32, #tpu.memory_space<vmem>>, vector<1x4x192xf32>
    %136 = vector.shape_cast %135 : vector<1x4x192xf32> to vector<4x192xf32>
    %137 = arith.truncf %122 : vector<4x64xf32> to vector<4x64xbf16>
    %cst_37 = arith.constant dense<0.000000e+00> : vector<4x192xf32>
    %138 = tpu.matmul %137, %0, %cst_37 {dimension_numbers = #tpu.dot_dimension_numbers<[1], [0], [0], [1], [0, 0, 1, 1], [], []>} : vector<4x64xbf16>, vector<64x192xbf16>, vector<4x192xf32> -> vector<4x192xf32>
    %139 = vector.extract_strided_slice %136 {offsets = [0, 0], sizes = [4, 64], strides = [1, 1]} : vector<4x192xf32> to vector<4x64xf32>
    %140 = vector.extract_strided_slice %138 {offsets = [0, 0], sizes = [4, 64], strides = [1, 1]} : vector<4x192xf32> to vector<4x64xf32>
    %141 = arith.addf %139, %140 : vector<4x64xf32>
    %142 = arith.negf %141 : vector<4x64xf32>
    %143 = math.exp %142 : vector<4x64xf32>
    %cst_38 = arith.constant 1.000000e+00 : f32
    %144 = vector.broadcast %cst_38 : f32 to vector<4x64xf32>
    %145 = arith.addf %144, %143 : vector<4x64xf32>
    %146 = arith.divf %144, %145 : vector<4x64xf32>
    %147 = vector.extract_strided_slice %136 {offsets = [0, 64], sizes = [4, 64], strides = [1, 1]} : vector<4x192xf32> to vector<4x64xf32>
    %148 = vector.extract_strided_slice %138 {offsets = [0, 64], sizes = [4, 64], strides = [1, 1]} : vector<4x192xf32> to vector<4x64xf32>
    %149 = arith.addf %147, %148 : vector<4x64xf32>
    %150 = arith.negf %149 : vector<4x64xf32>
    %151 = math.exp %150 : vector<4x64xf32>
    %cst_39 = arith.constant 1.000000e+00 : f32
    %152 = vector.broadcast %cst_39 : f32 to vector<4x64xf32>
    %153 = arith.addf %152, %151 : vector<4x64xf32>
    %154 = arith.divf %152, %153 : vector<4x64xf32>
    %155 = vector.extract_strided_slice %136 {offsets = [0, 128], sizes = [4, 64], strides = [1, 1]} : vector<4x192xf32> to vector<4x64xf32>
    %156 = vector.extract_strided_slice %138 {offsets = [0, 128], sizes = [4, 64], strides = [1, 1]} : vector<4x192xf32> to vector<4x64xf32>
    %157 = arith.addf %156, %3 : vector<4x64xf32>
    %158 = arith.mulf %146, %157 : vector<4x64xf32>
    %159 = arith.addf %155, %158 : vector<4x64xf32>
    %160 = math.tanh %159 : vector<4x64xf32>
    %cst_40 = arith.constant 1.000000e+00 : f32
    %161 = vector.broadcast %cst_40 : f32 to vector<4x64xf32>
    %162 = arith.subf %161, %154 : vector<4x64xf32>
    %163 = arith.mulf %162, %160 : vector<4x64xf32>
    %164 = arith.mulf %154, %122 : vector<4x64xf32>
    %165 = arith.addf %163, %164 : vector<4x64xf32>
    %166 = vector.extract_strided_slice %165 {offsets = [0, 0], sizes = [4, 32], strides = [1, 1]} : vector<4x64xf32> to vector<4x32xf32>
    %167 = arith.index_cast %c3_i32 : i32 to index
    %c0_41 = arith.constant 0 : index
    %c0_42 = arith.constant 0 : index
    %168 = vector.load %arg4[%167, %c0_41, %c0_42] : memref<8x4x32xf32, #tpu.memory_space<vmem>>, vector<1x4x32xf32>
    %169 = vector.shape_cast %168 : vector<1x4x32xf32> to vector<4x32xf32>
    %170 = vector.shape_cast %166 : vector<4x32xf32> to vector<1x4x32xf32>
    tpu.vector_store %arg4[%167, %c0_41, %c0_42], %170 {strides = array<i32>} : memref<8x4x32xf32, #tpu.memory_space<vmem>>, vector<1x4x32xf32>,
    %171 = vector.extract_strided_slice %165 {offsets = [0, 32], sizes = [4, 32], strides = [1, 1]} : vector<4x64xf32> to vector<4x32xf32>
    %c7_i32_43 = arith.constant 7 : i32
    %172 = arith.subi %c7_i32_43, %c3_i32 : i32
    %173 = arith.index_cast %172 : i32 to index
    %c0_44 = arith.constant 0 : index
    %c0_45 = arith.constant 0 : index
    %174 = vector.load %arg5[%173, %c0_44, %c0_45] : memref<8x4x32xf32, #tpu.memory_space<vmem>>, vector<1x4x32xf32>
    %175 = vector.shape_cast %174 : vector<1x4x32xf32> to vector<4x32xf32>
    %176 = vector.shape_cast %171 : vector<4x32xf32> to vector<1x4x32xf32>
    tpu.vector_store %arg5[%173, %c0_44, %c0_45], %176 {strides = array<i32>} : memref<8x4x32xf32, #tpu.memory_space<vmem>>, vector<1x4x32xf32>,
    %c4_i32 = arith.constant 4 : i32
    %177 = arith.index_cast %c4_i32 : i32 to index
    %c0_46 = arith.constant 0 : index
    %c0_47 = arith.constant 0 : index
    %178 = vector.load %arg1[%177, %c0_46, %c0_47] : memref<8x4x192xf32, #tpu.memory_space<vmem>>, vector<1x4x192xf32>
    %179 = vector.shape_cast %178 : vector<1x4x192xf32> to vector<4x192xf32>
    %180 = arith.truncf %165 : vector<4x64xf32> to vector<4x64xbf16>
    %cst_48 = arith.constant dense<0.000000e+00> : vector<4x192xf32>
    %181 = tpu.matmul %180, %0, %cst_48 {dimension_numbers = #tpu.dot_dimension_numbers<[1], [0], [0], [1], [0, 0, 1, 1], [], []>} : vector<4x64xbf16>, vector<64x192xbf16>, vector<4x192xf32> -> vector<4x192xf32>
    %182 = vector.extract_strided_slice %179 {offsets = [0, 0], sizes = [4, 64], strides = [1, 1]} : vector<4x192xf32> to vector<4x64xf32>
    %183 = vector.extract_strided_slice %181 {offsets = [0, 0], sizes = [4, 64], strides = [1, 1]} : vector<4x192xf32> to vector<4x64xf32>
    %184 = arith.addf %182, %183 : vector<4x64xf32>
    %185 = arith.negf %184 : vector<4x64xf32>
    %186 = math.exp %185 : vector<4x64xf32>
    %cst_49 = arith.constant 1.000000e+00 : f32
    %187 = vector.broadcast %cst_49 : f32 to vector<4x64xf32>
    %188 = arith.addf %187, %186 : vector<4x64xf32>
    %189 = arith.divf %187, %188 : vector<4x64xf32>
    %190 = vector.extract_strided_slice %179 {offsets = [0, 64], sizes = [4, 64], strides = [1, 1]} : vector<4x192xf32> to vector<4x64xf32>
    %191 = vector.extract_strided_slice %181 {offsets = [0, 64], sizes = [4, 64], strides = [1, 1]} : vector<4x192xf32> to vector<4x64xf32>
    %192 = arith.addf %190, %191 : vector<4x64xf32>
    %193 = arith.negf %192 : vector<4x64xf32>
    %194 = math.exp %193 : vector<4x64xf32>
    %cst_50 = arith.constant 1.000000e+00 : f32
    %195 = vector.broadcast %cst_50 : f32 to vector<4x64xf32>
    %196 = arith.addf %195, %194 : vector<4x64xf32>
    %197 = arith.divf %195, %196 : vector<4x64xf32>
    %198 = vector.extract_strided_slice %179 {offsets = [0, 128], sizes = [4, 64], strides = [1, 1]} : vector<4x192xf32> to vector<4x64xf32>
    %199 = vector.extract_strided_slice %181 {offsets = [0, 128], sizes = [4, 64], strides = [1, 1]} : vector<4x192xf32> to vector<4x64xf32>
    %200 = arith.addf %199, %3 : vector<4x64xf32>
    %201 = arith.mulf %189, %200 : vector<4x64xf32>
    %202 = arith.addf %198, %201 : vector<4x64xf32>
    %203 = math.tanh %202 : vector<4x64xf32>
    %cst_51 = arith.constant 1.000000e+00 : f32
    %204 = vector.broadcast %cst_51 : f32 to vector<4x64xf32>
    %205 = arith.subf %204, %197 : vector<4x64xf32>
    %206 = arith.mulf %205, %203 : vector<4x64xf32>
    %207 = arith.mulf %197, %165 : vector<4x64xf32>
    %208 = arith.addf %206, %207 : vector<4x64xf32>
    %209 = vector.extract_strided_slice %208 {offsets = [0, 0], sizes = [4, 32], strides = [1, 1]} : vector<4x64xf32> to vector<4x32xf32>
    %210 = arith.index_cast %c4_i32 : i32 to index
    %c0_52 = arith.constant 0 : index
    %c0_53 = arith.constant 0 : index
    %211 = vector.load %arg4[%210, %c0_52, %c0_53] : memref<8x4x32xf32, #tpu.memory_space<vmem>>, vector<1x4x32xf32>
    %212 = vector.shape_cast %211 : vector<1x4x32xf32> to vector<4x32xf32>
    %213 = vector.shape_cast %209 : vector<4x32xf32> to vector<1x4x32xf32>
    tpu.vector_store %arg4[%210, %c0_52, %c0_53], %213 {strides = array<i32>} : memref<8x4x32xf32, #tpu.memory_space<vmem>>, vector<1x4x32xf32>,
    %214 = vector.extract_strided_slice %208 {offsets = [0, 32], sizes = [4, 32], strides = [1, 1]} : vector<4x64xf32> to vector<4x32xf32>
    %c7_i32_54 = arith.constant 7 : i32
    %215 = arith.subi %c7_i32_54, %c4_i32 : i32
    %216 = arith.index_cast %215 : i32 to index
    %c0_55 = arith.constant 0 : index
    %c0_56 = arith.constant 0 : index
    %217 = vector.load %arg5[%216, %c0_55, %c0_56] : memref<8x4x32xf32, #tpu.memory_space<vmem>>, vector<1x4x32xf32>
    %218 = vector.shape_cast %217 : vector<1x4x32xf32> to vector<4x32xf32>
    %219 = vector.shape_cast %214 : vector<4x32xf32> to vector<1x4x32xf32>
    tpu.vector_store %arg5[%216, %c0_55, %c0_56], %219 {strides = array<i32>} : memref<8x4x32xf32, #tpu.memory_space<vmem>>, vector<1x4x32xf32>,
    %c5_i32 = arith.constant 5 : i32
    %220 = arith.index_cast %c5_i32 : i32 to index
    %c0_57 = arith.constant 0 : index
    %c0_58 = arith.constant 0 : index
    %221 = vector.load %arg1[%220, %c0_57, %c0_58] : memref<8x4x192xf32, #tpu.memory_space<vmem>>, vector<1x4x192xf32>
    %222 = vector.shape_cast %221 : vector<1x4x192xf32> to vector<4x192xf32>
    %223 = arith.truncf %208 : vector<4x64xf32> to vector<4x64xbf16>
    %cst_59 = arith.constant dense<0.000000e+00> : vector<4x192xf32>
    %224 = tpu.matmul %223, %0, %cst_59 {dimension_numbers = #tpu.dot_dimension_numbers<[1], [0], [0], [1], [0, 0, 1, 1], [], []>} : vector<4x64xbf16>, vector<64x192xbf16>, vector<4x192xf32> -> vector<4x192xf32>
    %225 = vector.extract_strided_slice %222 {offsets = [0, 0], sizes = [4, 64], strides = [1, 1]} : vector<4x192xf32> to vector<4x64xf32>
    %226 = vector.extract_strided_slice %224 {offsets = [0, 0], sizes = [4, 64], strides = [1, 1]} : vector<4x192xf32> to vector<4x64xf32>
    %227 = arith.addf %225, %226 : vector<4x64xf32>
    %228 = arith.negf %227 : vector<4x64xf32>
    %229 = math.exp %228 : vector<4x64xf32>
    %cst_60 = arith.constant 1.000000e+00 : f32
    %230 = vector.broadcast %cst_60 : f32 to vector<4x64xf32>
    %231 = arith.addf %230, %229 : vector<4x64xf32>
    %232 = arith.divf %230, %231 : vector<4x64xf32>
    %233 = vector.extract_strided_slice %222 {offsets = [0, 64], sizes = [4, 64], strides = [1, 1]} : vector<4x192xf32> to vector<4x64xf32>
    %234 = vector.extract_strided_slice %224 {offsets = [0, 64], sizes = [4, 64], strides = [1, 1]} : vector<4x192xf32> to vector<4x64xf32>
    %235 = arith.addf %233, %234 : vector<4x64xf32>
    %236 = arith.negf %235 : vector<4x64xf32>
    %237 = math.exp %236 : vector<4x64xf32>
    %cst_61 = arith.constant 1.000000e+00 : f32
    %238 = vector.broadcast %cst_61 : f32 to vector<4x64xf32>
    %239 = arith.addf %238, %237 : vector<4x64xf32>
    %240 = arith.divf %238, %239 : vector<4x64xf32>
    %241 = vector.extract_strided_slice %222 {offsets = [0, 128], sizes = [4, 64], strides = [1, 1]} : vector<4x192xf32> to vector<4x64xf32>
    %242 = vector.extract_strided_slice %224 {offsets = [0, 128], sizes = [4, 64], strides = [1, 1]} : vector<4x192xf32> to vector<4x64xf32>
    %243 = arith.addf %242, %3 : vector<4x64xf32>
    %244 = arith.mulf %232, %243 : vector<4x64xf32>
    %245 = arith.addf %241, %244 : vector<4x64xf32>
    %246 = math.tanh %245 : vector<4x64xf32>
    %cst_62 = arith.constant 1.000000e+00 : f32
    %247 = vector.broadcast %cst_62 : f32 to vector<4x64xf32>
    %248 = arith.subf %247, %240 : vector<4x64xf32>
    %249 = arith.mulf %248, %246 : vector<4x64xf32>
    %250 = arith.mulf %240, %208 : vector<4x64xf32>
    %251 = arith.addf %249, %250 : vector<4x64xf32>
    %252 = vector.extract_strided_slice %251 {offsets = [0, 0], sizes = [4, 32], strides = [1, 1]} : vector<4x64xf32> to vector<4x32xf32>
    %253 = arith.index_cast %c5_i32 : i32 to index
    %c0_63 = arith.constant 0 : index
    %c0_64 = arith.constant 0 : index
    %254 = vector.load %arg4[%253, %c0_63, %c0_64] : memref<8x4x32xf32, #tpu.memory_space<vmem>>, vector<1x4x32xf32>
    %255 = vector.shape_cast %254 : vector<1x4x32xf32> to vector<4x32xf32>
    %256 = vector.shape_cast %252 : vector<4x32xf32> to vector<1x4x32xf32>
    tpu.vector_store %arg4[%253, %c0_63, %c0_64], %256 {strides = array<i32>} : memref<8x4x32xf32, #tpu.memory_space<vmem>>, vector<1x4x32xf32>,
    %257 = vector.extract_strided_slice %251 {offsets = [0, 32], sizes = [4, 32], strides = [1, 1]} : vector<4x64xf32> to vector<4x32xf32>
    %c7_i32_65 = arith.constant 7 : i32
    %258 = arith.subi %c7_i32_65, %c5_i32 : i32
    %259 = arith.index_cast %258 : i32 to index
    %c0_66 = arith.constant 0 : index
    %c0_67 = arith.constant 0 : index
    %260 = vector.load %arg5[%259, %c0_66, %c0_67] : memref<8x4x32xf32, #tpu.memory_space<vmem>>, vector<1x4x32xf32>
    %261 = vector.shape_cast %260 : vector<1x4x32xf32> to vector<4x32xf32>
    %262 = vector.shape_cast %257 : vector<4x32xf32> to vector<1x4x32xf32>
    tpu.vector_store %arg5[%259, %c0_66, %c0_67], %262 {strides = array<i32>} : memref<8x4x32xf32, #tpu.memory_space<vmem>>, vector<1x4x32xf32>,
    %c6_i32 = arith.constant 6 : i32
    %263 = arith.index_cast %c6_i32 : i32 to index
    %c0_68 = arith.constant 0 : index
    %c0_69 = arith.constant 0 : index
    %264 = vector.load %arg1[%263, %c0_68, %c0_69] : memref<8x4x192xf32, #tpu.memory_space<vmem>>, vector<1x4x192xf32>
    %265 = vector.shape_cast %264 : vector<1x4x192xf32> to vector<4x192xf32>
    %266 = arith.truncf %251 : vector<4x64xf32> to vector<4x64xbf16>
    %cst_70 = arith.constant dense<0.000000e+00> : vector<4x192xf32>
    %267 = tpu.matmul %266, %0, %cst_70 {dimension_numbers = #tpu.dot_dimension_numbers<[1], [0], [0], [1], [0, 0, 1, 1], [], []>} : vector<4x64xbf16>, vector<64x192xbf16>, vector<4x192xf32> -> vector<4x192xf32>
    %268 = vector.extract_strided_slice %265 {offsets = [0, 0], sizes = [4, 64], strides = [1, 1]} : vector<4x192xf32> to vector<4x64xf32>
    %269 = vector.extract_strided_slice %267 {offsets = [0, 0], sizes = [4, 64], strides = [1, 1]} : vector<4x192xf32> to vector<4x64xf32>
    %270 = arith.addf %268, %269 : vector<4x64xf32>
    %271 = arith.negf %270 : vector<4x64xf32>
    %272 = math.exp %271 : vector<4x64xf32>
    %cst_71 = arith.constant 1.000000e+00 : f32
    %273 = vector.broadcast %cst_71 : f32 to vector<4x64xf32>
    %274 = arith.addf %273, %272 : vector<4x64xf32>
    %275 = arith.divf %273, %274 : vector<4x64xf32>
    %276 = vector.extract_strided_slice %265 {offsets = [0, 64], sizes = [4, 64], strides = [1, 1]} : vector<4x192xf32> to vector<4x64xf32>
    %277 = vector.extract_strided_slice %267 {offsets = [0, 64], sizes = [4, 64], strides = [1, 1]} : vector<4x192xf32> to vector<4x64xf32>
    %278 = arith.addf %276, %277 : vector<4x64xf32>
    %279 = arith.negf %278 : vector<4x64xf32>
    %280 = math.exp %279 : vector<4x64xf32>
    %cst_72 = arith.constant 1.000000e+00 : f32
    %281 = vector.broadcast %cst_72 : f32 to vector<4x64xf32>
    %282 = arith.addf %281, %280 : vector<4x64xf32>
    %283 = arith.divf %281, %282 : vector<4x64xf32>
    %284 = vector.extract_strided_slice %265 {offsets = [0, 128], sizes = [4, 64], strides = [1, 1]} : vector<4x192xf32> to vector<4x64xf32>
    %285 = vector.extract_strided_slice %267 {offsets = [0, 128], sizes = [4, 64], strides = [1, 1]} : vector<4x192xf32> to vector<4x64xf32>
    %286 = arith.addf %285, %3 : vector<4x64xf32>
    %287 = arith.mulf %275, %286 : vector<4x64xf32>
    %288 = arith.addf %284, %287 : vector<4x64xf32>
    %289 = math.tanh %288 : vector<4x64xf32>
    %cst_73 = arith.constant 1.000000e+00 : f32
    %290 = vector.broadcast %cst_73 : f32 to vector<4x64xf32>
    %291 = arith.subf %290, %283 : vector<4x64xf32>
    %292 = arith.mulf %291, %289 : vector<4x64xf32>
    %293 = arith.mulf %283, %251 : vector<4x64xf32>
    %294 = arith.addf %292, %293 : vector<4x64xf32>
    %295 = vector.extract_strided_slice %294 {offsets = [0, 0], sizes = [4, 32], strides = [1, 1]} : vector<4x64xf32> to vector<4x32xf32>
    %296 = arith.index_cast %c6_i32 : i32 to index
    %c0_74 = arith.constant 0 : index
    %c0_75 = arith.constant 0 : index
    %297 = vector.load %arg4[%296, %c0_74, %c0_75] : memref<8x4x32xf32, #tpu.memory_space<vmem>>, vector<1x4x32xf32>
    %298 = vector.shape_cast %297 : vector<1x4x32xf32> to vector<4x32xf32>
    %299 = vector.shape_cast %295 : vector<4x32xf32> to vector<1x4x32xf32>
    tpu.vector_store %arg4[%296, %c0_74, %c0_75], %299 {strides = array<i32>} : memref<8x4x32xf32, #tpu.memory_space<vmem>>, vector<1x4x32xf32>,
    %300 = vector.extract_strided_slice %294 {offsets = [0, 32], sizes = [4, 32], strides = [1, 1]} : vector<4x64xf32> to vector<4x32xf32>
    %c7_i32_76 = arith.constant 7 : i32
    %301 = arith.subi %c7_i32_76, %c6_i32 : i32
    %302 = arith.index_cast %301 : i32 to index
    %c0_77 = arith.constant 0 : index
    %c0_78 = arith.constant 0 : index
    %303 = vector.load %arg5[%302, %c0_77, %c0_78] : memref<8x4x32xf32, #tpu.memory_space<vmem>>, vector<1x4x32xf32>
    %304 = vector.shape_cast %303 : vector<1x4x32xf32> to vector<4x32xf32>
    %305 = vector.shape_cast %300 : vector<4x32xf32> to vector<1x4x32xf32>
    tpu.vector_store %arg5[%302, %c0_77, %c0_78], %305 {strides = array<i32>} : memref<8x4x32xf32, #tpu.memory_space<vmem>>, vector<1x4x32xf32>,
    %c7_i32_79 = arith.constant 7 : i32
    %306 = arith.index_cast %c7_i32_79 : i32 to index
    %c0_80 = arith.constant 0 : index
    %c0_81 = arith.constant 0 : index
    %307 = vector.load %arg1[%306, %c0_80, %c0_81] : memref<8x4x192xf32, #tpu.memory_space<vmem>>, vector<1x4x192xf32>
    %308 = vector.shape_cast %307 : vector<1x4x192xf32> to vector<4x192xf32>
    %309 = arith.truncf %294 : vector<4x64xf32> to vector<4x64xbf16>
    %cst_82 = arith.constant dense<0.000000e+00> : vector<4x192xf32>
    %310 = tpu.matmul %309, %0, %cst_82 {dimension_numbers = #tpu.dot_dimension_numbers<[1], [0], [0], [1], [0, 0, 1, 1], [], []>} : vector<4x64xbf16>, vector<64x192xbf16>, vector<4x192xf32> -> vector<4x192xf32>
    %311 = vector.extract_strided_slice %308 {offsets = [0, 0], sizes = [4, 64], strides = [1, 1]} : vector<4x192xf32> to vector<4x64xf32>
    %312 = vector.extract_strided_slice %310 {offsets = [0, 0], sizes = [4, 64], strides = [1, 1]} : vector<4x192xf32> to vector<4x64xf32>
    %313 = arith.addf %311, %312 : vector<4x64xf32>
    %314 = arith.negf %313 : vector<4x64xf32>
    %315 = math.exp %314 : vector<4x64xf32>
    %cst_83 = arith.constant 1.000000e+00 : f32
    %316 = vector.broadcast %cst_83 : f32 to vector<4x64xf32>
    %317 = arith.addf %316, %315 : vector<4x64xf32>
    %318 = arith.divf %316, %317 : vector<4x64xf32>
    %319 = vector.extract_strided_slice %308 {offsets = [0, 64], sizes = [4, 64], strides = [1, 1]} : vector<4x192xf32> to vector<4x64xf32>
    %320 = vector.extract_strided_slice %310 {offsets = [0, 64], sizes = [4, 64], strides = [1, 1]} : vector<4x192xf32> to vector<4x64xf32>
    %321 = arith.addf %319, %320 : vector<4x64xf32>
    %322 = arith.negf %321 : vector<4x64xf32>
    %323 = math.exp %322 : vector<4x64xf32>
    %cst_84 = arith.constant 1.000000e+00 : f32
    %324 = vector.broadcast %cst_84 : f32 to vector<4x64xf32>
    %325 = arith.addf %324, %323 : vector<4x64xf32>
    %326 = arith.divf %324, %325 : vector<4x64xf32>
    %327 = vector.extract_strided_slice %308 {offsets = [0, 128], sizes = [4, 64], strides = [1, 1]} : vector<4x192xf32> to vector<4x64xf32>
    %328 = vector.extract_strided_slice %310 {offsets = [0, 128], sizes = [4, 64], strides = [1, 1]} : vector<4x192xf32> to vector<4x64xf32>
    %329 = arith.addf %328, %3 : vector<4x64xf32>
    %330 = arith.mulf %318, %329 : vector<4x64xf32>
    %331 = arith.addf %327, %330 : vector<4x64xf32>
    %332 = math.tanh %331 : vector<4x64xf32>
    %cst_85 = arith.constant 1.000000e+00 : f32
    %333 = vector.broadcast %cst_85 : f32 to vector<4x64xf32>
    %334 = arith.subf %333, %326 : vector<4x64xf32>
    %335 = arith.mulf %334, %332 : vector<4x64xf32>
    %336 = arith.mulf %326, %294 : vector<4x64xf32>
    %337 = arith.addf %335, %336 : vector<4x64xf32>
    %338 = vector.extract_strided_slice %337 {offsets = [0, 0], sizes = [4, 32], strides = [1, 1]} : vector<4x64xf32> to vector<4x32xf32>
    %339 = arith.index_cast %c7_i32_79 : i32 to index
    %c0_86 = arith.constant 0 : index
    %c0_87 = arith.constant 0 : index
    %340 = vector.load %arg4[%339, %c0_86, %c0_87] : memref<8x4x32xf32, #tpu.memory_space<vmem>>, vector<1x4x32xf32>
    %341 = vector.shape_cast %340 : vector<1x4x32xf32> to vector<4x32xf32>
    %342 = vector.shape_cast %338 : vector<4x32xf32> to vector<1x4x32xf32>
    tpu.vector_store %arg4[%339, %c0_86, %c0_87], %342 {strides = array<i32>} : memref<8x4x32xf32, #tpu.memory_space<vmem>>, vector<1x4x32xf32>,
    %343 = vector.extract_strided_slice %337 {offsets = [0, 32], sizes = [4, 32], strides = [1, 1]} : vector<4x64xf32> to vector<4x32xf32>
    %c7_i32_88 = arith.constant 7 : i32
    %344 = arith.subi %c7_i32_88, %c7_i32_79 : i32
    %345 = arith.index_cast %344 : i32 to index
    %c0_89 = arith.constant 0 : index
    %c0_90 = arith.constant 0 : index
    %346 = vector.load %arg5[%345, %c0_89, %c0_90] : memref<8x4x32xf32, #tpu.memory_space<vmem>>, vector<1x4x32xf32>
    %347 = vector.shape_cast %346 : vector<1x4x32xf32> to vector<4x32xf32>
    %348 = vector.shape_cast %343 : vector<4x32xf32> to vector<1x4x32xf32>
    tpu.vector_store %arg5[%345, %c0_89, %c0_90], %348 {strides = array<i32>} : memref<8x4x32xf32, #tpu.memory_space<vmem>>, vector<1x4x32xf32>,
    %c8_i32 = arith.constant 8 : i32
    return
  }
  func.func @transform_0(%arg0: i32) -> (i32, i32, i32) {
    %c0_i32 = arith.constant 0 : i32
    %c0_i32_0 = arith.constant 0 : i32
    %c0_i32_1 = arith.constant 0 : i32
    %c0_i32_2 = arith.constant 0 : i32
    return %c0_i32, %c0_i32_0, %c0_i32_1 : i32, i32, i32
  }
  func.func @transform_1(%arg0: i32) -> (i32, i32) {
    %c0_i32 = arith.constant 0 : i32
    %c0_i32_0 = arith.constant 0 : i32
    %c0_i32_1 = arith.constant 0 : i32
    return %c0_i32, %c0_i32_0 : i32, i32
  }
  func.func @transform_2(%arg0: i32) -> (i32, i32) {
    %c0_i32 = arith.constant 0 : i32
    %c0_i32_0 = arith.constant 0 : i32
    %c0_i32_1 = arith.constant 0 : i32
    return %c0_i32, %c0_i32_0 : i32, i32
  }
  func.func @transform_3(%arg0: i32) -> (i32, i32, i32) {
    %c0_i32 = arith.constant 0 : i32
    %c0_i32_0 = arith.constant 0 : i32
    %c0_i32_1 = arith.constant 0 : i32
    %c0_i32_2 = arith.constant 0 : i32
    return %c0_i32, %c0_i32_0, %c0_i32_1 : i32, i32, i32
  }
  func.func @transform_4(%arg0: i32) -> (i32, i32, i32) {
    %c0_i32 = arith.constant 0 : i32
    %c0_i32_0 = arith.constant 0 : i32
    %c0_i32_1 = arith.constant 0 : i32
    %c0_i32_2 = arith.constant 0 : i32
    return %c0_i32, %c0_i32_0, %c0_i32_1 : i32, i32, i32
  }
}

module attributes {stable_mosaic.version = 11 : i64} {
  func.func @_attn_head_kernel(%arg0: i32, %arg1: memref<4x8x64xf32, #tpu.memory_space<vmem>>, %arg2: memref<4x8xf32, #tpu.memory_space<vmem>>, %arg3: memref<64x64xbf16, #tpu.memory_space<vmem>>, %arg4: memref<1x64xf32, #tpu.memory_space<vmem>>, %arg5: memref<64x32xbf16, #tpu.memory_space<vmem>>, %arg6: memref<1x32xf32, #tpu.memory_space<vmem>>, %arg7: memref<32x7xbf16, #tpu.memory_space<vmem>>, %arg8: memref<1x7xf32, #tpu.memory_space<vmem>>, %arg9: memref<4x8x7xf32, #tpu.memory_space<vmem>>, %arg10: memref<4x8x8xf32, #tpu.memory_space<vmem>>) attributes {dimension_semantics = [#tpu.dimension_semantics<arbitrary>], iteration_bounds = array<i64: 1>, scalar_prefetch = 0 : i64, scratch_operands = 0 : i64, tpu.core_type = #tpu.core_type<tc>, window_params = [{pipeline_mode = #tpu.pipeline_mode<synchronous>, transform_indices = @transform_0, window_bounds = array<i64: 4, 8, 64>}, {pipeline_mode = #tpu.pipeline_mode<synchronous>, transform_indices = @transform_1, window_bounds = array<i64: 4, 8>}, {pipeline_mode = #tpu.pipeline_mode<synchronous>, transform_indices = @transform_2, window_bounds = array<i64: 64, 64>}, {pipeline_mode = #tpu.pipeline_mode<synchronous>, transform_indices = @transform_3, window_bounds = array<i64: 1, 64>}, {pipeline_mode = #tpu.pipeline_mode<synchronous>, transform_indices = @transform_4, window_bounds = array<i64: 64, 32>}, {pipeline_mode = #tpu.pipeline_mode<synchronous>, transform_indices = @transform_5, window_bounds = array<i64: 1, 32>}, {pipeline_mode = #tpu.pipeline_mode<synchronous>, transform_indices = @transform_6, window_bounds = array<i64: 32, 7>}, {pipeline_mode = #tpu.pipeline_mode<synchronous>, transform_indices = @transform_7, window_bounds = array<i64: 1, 7>}, {pipeline_mode = #tpu.pipeline_mode<synchronous>, transform_indices = @transform_8, window_bounds = array<i64: 4, 8, 7>}, {pipeline_mode = #tpu.pipeline_mode<synchronous>, transform_indices = @transform_9, window_bounds = array<i64: 4, 8, 8>}]} {
    %c0 = arith.constant 0 : index
    %c0_0 = arith.constant 0 : index
    %c0_1 = arith.constant 0 : index
    %0 = vector.load %arg1[%c0, %c0_0, %c0_1] : memref<4x8x64xf32, #tpu.memory_space<vmem>>, vector<4x8x64xf32>
    %c0_2 = arith.constant 0 : index
    %c0_3 = arith.constant 0 : index
    %1 = vector.load %arg2[%c0_2, %c0_3] : memref<4x8xf32, #tpu.memory_space<vmem>>, vector<4x8xf32>
    %2 = arith.truncf %0 : vector<4x8x64xf32> to vector<4x8x64xbf16>
    %3 = vector.shape_cast %0 : vector<4x8x64xf32> to vector<32x64xf32>
    %4 = arith.truncf %3 : vector<32x64xf32> to vector<32x64xbf16>
    %c0_4 = arith.constant 0 : index
    %c0_5 = arith.constant 0 : index
    %5 = vector.load %arg3[%c0_4, %c0_5] : memref<64x64xbf16, #tpu.memory_space<vmem>>, vector<64x64xbf16>
    %cst = arith.constant dense<0.000000e+00> : vector<32x64xf32>
    %6 = tpu.matmul %4, %5, %cst {dimension_numbers = #tpu.dot_dimension_numbers<[1], [0], [0], [1], [0, 0, 1, 1], [], []>} : vector<32x64xbf16>, vector<64x64xbf16>, vector<32x64xf32> -> vector<32x64xf32>
    %c0_6 = arith.constant 0 : index
    %c0_7 = arith.constant 0 : index
    %7 = vector.load %arg4[%c0_6, %c0_7] : memref<1x64xf32, #tpu.memory_space<vmem>>, vector<1x64xf32>
    %8 = vector.broadcast %7 : vector<1x64xf32> to vector<32x64xf32>
    %9 = arith.addf %6, %8 : vector<32x64xf32>
    %10 = vector.shape_cast %9 : vector<32x64xf32> to vector<4x8x64xf32>
    %11 = vector.shape_cast %1 : vector<4x8xf32> to vector<4x8x1xf32>
    %12 = vector.broadcast %11 : vector<4x8x1xf32> to vector<4x8x64xf32>
    %13 = arith.mulf %0, %12 : vector<4x8x64xf32>
    %14 = arith.truncf %13 : vector<4x8x64xf32> to vector<4x8x64xbf16>
    %15 = arith.truncf %10 : vector<4x8x64xf32> to vector<4x8x64xbf16>
    "tpu.trace_start"() <{level = 10 : i32, message = "bqd,bkd->bqk"}> : () -> ()
    %cst_8 = arith.constant dense<0.000000e+00> : vector<4x8x8xf32>
    %16 = tpu.matmul %15, %14, %cst_8 {dimension_numbers = #tpu.dot_dimension_numbers<[2], [2], [1], [1], [0, 0, 0, 1, 1, 1], [0], [0]>} : vector<4x8x64xbf16>, vector<4x8x64xbf16>, vector<4x8x8xf32> -> vector<4x8x8xf32>
    "tpu.trace_stop"() : () -> ()
    %17 = vector.shape_cast %1 : vector<4x8xf32> to vector<4x1x8xf32>
    %18 = vector.broadcast %17 : vector<4x1x8xf32> to vector<4x8x8xf32>
    %19 = arith.mulf %16, %18 : vector<4x8x8xf32>
    %20 = math.tanh %19 : vector<4x8x8xf32>
    %cst_9 = arith.constant dense<0xFF800000> : vector<4x8xf32>
    %21 = vector.multi_reduction <maximumf>, %20, %cst_9 [2] : vector<4x8x8xf32> to vector<4x8xf32>
    %22 = vector.shape_cast %21 : vector<4x8xf32> to vector<4x8x1xf32>
    %23 = vector.broadcast %22 : vector<4x8x1xf32> to vector<4x8x8xf32>
    %24 = arith.subf %20, %23 : vector<4x8x8xf32>
    %25 = math.exp %24 : vector<4x8x8xf32>
    %cst_10 = arith.constant dense<0.000000e+00> : vector<4x8xf32>
    %26 = vector.multi_reduction <add>, %25, %cst_10 [2] : vector<4x8x8xf32> to vector<4x8xf32>
    %27 = vector.shape_cast %26 : vector<4x8xf32> to vector<4x8x1xf32>
    %28 = tpu.reciprocal %27 {approx = true} : vector<4x8x1xf32> -> vector<4x8x1xf32>
    %29 = vector.broadcast %28 : vector<4x8x1xf32> to vector<4x8x8xf32>
    %30 = arith.mulf %25, %29 : vector<4x8x8xf32>
    %31 = vector.shape_cast %1 : vector<4x8xf32> to vector<4x1x8xf32>
    %32 = vector.broadcast %31 : vector<4x1x8xf32> to vector<4x8x8xf32>
    %33 = arith.mulf %30, %32 : vector<4x8x8xf32>
    %cst_11 = arith.constant dense<0.000000e+00> : vector<4x8xf32>
    %34 = vector.multi_reduction <add>, %33, %cst_11 [2] : vector<4x8x8xf32> to vector<4x8xf32>
    %35 = vector.shape_cast %34 : vector<4x8xf32> to vector<4x8x1xf32>
    %36 = tpu.reciprocal %35 {approx = true} : vector<4x8x1xf32> -> vector<4x8x1xf32>
    %37 = vector.broadcast %36 : vector<4x8x1xf32> to vector<4x8x8xf32>
    %38 = arith.mulf %33, %37 : vector<4x8x8xf32>
    %c0_12 = arith.constant 0 : index
    %c0_13 = arith.constant 0 : index
    %c0_14 = arith.constant 0 : index
    %39 = vector.load %arg10[%c0_12, %c0_13, %c0_14] : memref<4x8x8xf32, #tpu.memory_space<vmem>>, vector<4x8x8xf32>
    tpu.vector_store %arg10[%c0_12, %c0_13, %c0_14], %38 {strides = array<i32>} : memref<4x8x8xf32, #tpu.memory_space<vmem>>, vector<4x8x8xf32>,
    %40 = arith.truncf %38 : vector<4x8x8xf32> to vector<4x8x8xbf16>
    "tpu.trace_start"() <{level = 10 : i32, message = "bqk,bkd->bqd"}> : () -> ()
    %cst_15 = arith.constant dense<0.000000e+00> : vector<4x8x64xf32>
    %41 = tpu.matmul %40, %2, %cst_15 {dimension_numbers = #tpu.dot_dimension_numbers<[2], [1], [1], [2], [0, 0, 0, 1, 1, 2], [0], [0]>} : vector<4x8x8xbf16>, vector<4x8x64xbf16>, vector<4x8x64xf32> -> vector<4x8x64xf32>
    "tpu.trace_stop"() : () -> ()
    %42 = vector.shape_cast %41 : vector<4x8x64xf32> to vector<32x64xf32>
    %43 = arith.truncf %42 : vector<32x64xf32> to vector<32x64xbf16>
    %c0_16 = arith.constant 0 : index
    %c0_17 = arith.constant 0 : index
    %44 = vector.load %arg5[%c0_16, %c0_17] : memref<64x32xbf16, #tpu.memory_space<vmem>>, vector<64x32xbf16>
    %cst_18 = arith.constant dense<0.000000e+00> : vector<32x32xf32>
    %45 = tpu.matmul %43, %44, %cst_18 {dimension_numbers = #tpu.dot_dimension_numbers<[1], [0], [0], [1], [0, 0, 1, 1], [], []>} : vector<32x64xbf16>, vector<64x32xbf16>, vector<32x32xf32> -> vector<32x32xf32>
    %c0_19 = arith.constant 0 : index
    %c0_20 = arith.constant 0 : index
    %46 = vector.load %arg6[%c0_19, %c0_20] : memref<1x32xf32, #tpu.memory_space<vmem>>, vector<1x32xf32>
    %47 = vector.broadcast %46 : vector<1x32xf32> to vector<32x32xf32>
    %48 = arith.addf %45, %47 : vector<32x32xf32>
    %cst_21 = arith.constant 0.000000e+00 : f32
    %49 = vector.broadcast %cst_21 : f32 to vector<32x32xf32>
    %50 = arith.maximumf %48, %49 : vector<32x32xf32>
    %51 = arith.truncf %50 : vector<32x32xf32> to vector<32x32xbf16>
    %c0_22 = arith.constant 0 : index
    %c0_23 = arith.constant 0 : index
    %52 = vector.load %arg7[%c0_22, %c0_23] : memref<32x7xbf16, #tpu.memory_space<vmem>>, vector<32x7xbf16>
    %cst_24 = arith.constant dense<0.000000e+00> : vector<32x7xf32>
    %53 = tpu.matmul %51, %52, %cst_24 {dimension_numbers = #tpu.dot_dimension_numbers<[1], [0], [0], [1], [0, 0, 1, 1], [], []>} : vector<32x32xbf16>, vector<32x7xbf16>, vector<32x7xf32> -> vector<32x7xf32>
    %c0_25 = arith.constant 0 : index
    %c0_26 = arith.constant 0 : index
    %54 = vector.load %arg8[%c0_25, %c0_26] : memref<1x7xf32, #tpu.memory_space<vmem>>, vector<1x7xf32>
    %55 = vector.broadcast %54 : vector<1x7xf32> to vector<32x7xf32>
    %56 = arith.addf %53, %55 : vector<32x7xf32>
    %cst_27 = arith.constant dense<0xFF800000> : vector<32xf32>
    %57 = vector.multi_reduction <maximumf>, %56, %cst_27 [1] : vector<32x7xf32> to vector<32xf32>
    %58 = vector.shape_cast %57 : vector<32xf32> to vector<32x1xf32>
    %59 = vector.broadcast %58 : vector<32x1xf32> to vector<32x7xf32>
    %60 = arith.subf %56, %59 : vector<32x7xf32>
    %61 = math.exp %60 : vector<32x7xf32>
    %cst_28 = arith.constant dense<0.000000e+00> : vector<32xf32>
    %62 = vector.multi_reduction <add>, %61, %cst_28 [1] : vector<32x7xf32> to vector<32xf32>
    %63 = vector.shape_cast %62 : vector<32xf32> to vector<32x1xf32>
    %64 = math.log %63 : vector<32x1xf32>
    %65 = arith.addf %58, %64 : vector<32x1xf32>
    %66 = vector.broadcast %65 : vector<32x1xf32> to vector<32x7xf32>
    %67 = arith.subf %56, %66 : vector<32x7xf32>
    %68 = vector.shape_cast %67 : vector<32x7xf32> to vector<4x8x7xf32>
    %c0_29 = arith.constant 0 : index
    %c0_30 = arith.constant 0 : index
    %c0_31 = arith.constant 0 : index
    %69 = vector.load %arg9[%c0_29, %c0_30, %c0_31] : memref<4x8x7xf32, #tpu.memory_space<vmem>>, vector<4x8x7xf32>
    tpu.vector_store %arg9[%c0_29, %c0_30, %c0_31], %68 {strides = array<i32>} : memref<4x8x7xf32, #tpu.memory_space<vmem>>, vector<4x8x7xf32>,
    return
  }
  func.func @transform_0(%arg0: i32) -> (i32, i32, i32) {
    %c0_i32 = arith.constant 0 : i32
    %c0_i32_0 = arith.constant 0 : i32
    %c0_i32_1 = arith.constant 0 : i32
    %c0_i32_2 = arith.constant 0 : i32
    return %c0_i32, %c0_i32_0, %c0_i32_1 : i32, i32, i32
  }
  func.func @transform_1(%arg0: i32) -> (i32, i32) {
    %c0_i32 = arith.constant 0 : i32
    %c0_i32_0 = arith.constant 0 : i32
    %c0_i32_1 = arith.constant 0 : i32
    return %c0_i32, %c0_i32_0 : i32, i32
  }
  func.func @transform_2(%arg0: i32) -> (i32, i32) {
    %c0_i32 = arith.constant 0 : i32
    %c0_i32_0 = arith.constant 0 : i32
    %c0_i32_1 = arith.constant 0 : i32
    return %c0_i32, %c0_i32_0 : i32, i32
  }
  func.func @transform_3(%arg0: i32) -> (i32, i32) {
    %c0_i32 = arith.constant 0 : i32
    %c0_i32_0 = arith.constant 0 : i32
    %c0_i32_1 = arith.constant 0 : i32
    return %c0_i32, %c0_i32_0 : i32, i32
  }
  func.func @transform_4(%arg0: i32) -> (i32, i32) {
    %c0_i32 = arith.constant 0 : i32
    %c0_i32_0 = arith.constant 0 : i32
    %c0_i32_1 = arith.constant 0 : i32
    return %c0_i32, %c0_i32_0 : i32, i32
  }
  func.func @transform_5(%arg0: i32) -> (i32, i32) {
    %c0_i32 = arith.constant 0 : i32
    %c0_i32_0 = arith.constant 0 : i32
    %c0_i32_1 = arith.constant 0 : i32
    return %c0_i32, %c0_i32_0 : i32, i32
  }
  func.func @transform_6(%arg0: i32) -> (i32, i32) {
    %c0_i32 = arith.constant 0 : i32
    %c0_i32_0 = arith.constant 0 : i32
    %c0_i32_1 = arith.constant 0 : i32
    return %c0_i32, %c0_i32_0 : i32, i32
  }
  func.func @transform_7(%arg0: i32) -> (i32, i32) {
    %c0_i32 = arith.constant 0 : i32
    %c0_i32_0 = arith.constant 0 : i32
    %c0_i32_1 = arith.constant 0 : i32
    return %c0_i32, %c0_i32_0 : i32, i32
  }
  func.func @transform_8(%arg0: i32) -> (i32, i32, i32) {
    %c0_i32 = arith.constant 0 : i32
    %c0_i32_0 = arith.constant 0 : i32
    %c0_i32_1 = arith.constant 0 : i32
    %c0_i32_2 = arith.constant 0 : i32
    return %c0_i32, %c0_i32_0, %c0_i32_1 : i32, i32, i32
  }
  func.func @transform_9(%arg0: i32) -> (i32, i32, i32) {
    %c0_i32 = arith.constant 0 : i32
    %c0_i32_0 = arith.constant 0 : i32
    %c0_i32_1 = arith.constant 0 : i32
    %c0_i32_2 = arith.constant 0 : i32
    return %c0_i32, %c0_i32_0, %c0_i32_1 : i32, i32, i32
  }
}

</mosaic_0001>

<bundles_post_ra>
// kernel: reverse
= control target key start
LH: loop header
LB: loop body
LE: loop exit
PB: predicated region body
PF: predicated region fallthrough
CT: control target
= control target key end

     0   :  { %s104_s0 = inlined_call_operand.vmem [shape: f32[8,4,32], index: 0, kind: input, shape index: {}]   ;;  %s105_s1 = inlined_call_operand.vmem [shape: f32[8,4,32], index: 1, kind: output, shape index: {}]  }
   0x1   :  { %v32_v0 = vld [vmem:[%s104_s0 + $0x1c] sm:$0xf]  ;;  %v33_v1 = vld [vmem:[%s104_s0 + $0x18] sm:$0xf]  ;;  %v35_v2 = vld [vmem:[%s104_s0 + $0x14] sm:$0xf] }
   0x2   :  { %4 = vst [vmem:[%s105_s1] sm:$0xf] %v32_v0  ;;  %34 = vst [vmem:[%s105_s1 + $0x4] sm:$0xf] %v33_v1  ;;  %v37_v3 = vld [vmem:[%s104_s0 + $0x10] sm:$0xf] }
   0x3   :  { %36 = vst [vmem:[%s105_s1 + $0x8] sm:$0xf] %v35_v2  ;;  %v39_v4 = vld [vmem:[%s104_s0 + $0xc] sm:$0xf]  ;;  %v41_v5 = vld [vmem:[%s104_s0 + $0x8] sm:$0xf] }
   0x4   :  { %38 = vst [vmem:[%s105_s1 + $0xc] sm:$0xf] %v37_v3  ;;  %40 = vst [vmem:[%s105_s1 + $0x10] sm:$0xf] %v39_v4  ;;  %v43_v6 = vld [vmem:[%s104_s0 + $0x4] sm:$0xf] }
   0x5   :  { %42 = vst [vmem:[%s105_s1 + $0x14] sm:$0xf] %v41_v5  ;;  %v29_v7 = vld [vmem:[%s104_s0] sm:$0xf]  ;;  %44 = vst [vmem:[%s105_s1 + $0x18] sm:$0xf] %v43_v6 }
   0x6   :  { %45 = vst [vmem:[%s105_s1 + $0x1c] sm:$0xf] %v29_v7 }

// kernel: _lambda_.3
= control target key start
LH: loop header
LB: loop body
LE: loop exit
PB: predicated region body
PF: predicated region fallthrough
CT: control target
= control target key end

     0   :  { %v847_v1 = vmov 0   ;;  %s848_s8 = smov 64   ;;  %vm73_vm0 = vcmask 523264   ;;  %vm144_vm1 = vcmask 257024   ;;  %s1161_s1 = inlined_call_operand.vmem [shape: bf16[64,192], index: 1, kind: input, shape index: {}]   ;;  %s1162_s0 = inlined_call_operand.vmem [shape: f32[8,4,192], index: 0, kind: input, shape index: {}]   ;;  %s1163_s2 = inlined_call_operand.vmem [shape: f32[1,64], index: 2, kind: input, shape index: {}]   ;;  %s1164_s3 = inlined_call_operand.vmem [shape: f32[8,4,32], index: 3, kind: output, shape index: {0}]   ;;  %s1165_s4 = inlined_call_operand.vmem [shape: f32[8,4,32], index: 4, kind: output, shape index: {1}]  }
   0x1   :  { %v878_v0 = vld [vmem:[%s1161_s1 + $0x4] ss:$8 sps:$4 sm:$0xff]   ;;  %109 = vmatprep.mubr.bf16.mxu0 %v847_v1  ;;  %192 = vmatprep.mubr.bf16.mxu1 %v847_v1  ;;  %v885_v2 = vld [vmem:[%s1161_s1] ss:$8 sps:$4 sm:$0xff]   ;;  %v891_v3 = vld [vmem:[%s1161_s1 + $0x14] ss:$8 sps:$4 sm:$0xff]  }
   0x2   :  { %77 = vmatprep.subr.bf16.mxu0 %v878_v0  ;;  %160 = vmatprep.subr.bf16.mxu1 %v878_v0  ;;  %v898_v4 = vld [vmem:[%s1161_s1 + $0x10] ss:$8 sps:$4 sm:$0xff]   ;;  %v905_v5 = vld [vmem:[%s1161_s1 + $0x24] ss:$8 sps:$4 sm:$0xff]   ;;  %v912_v6 = vld [vmem:[%s1161_s1 + $0x20] ss:$8 sps:$4 sm:$0xff]  }
   0x3   :  { %78 = vmatpush1.bf16.msra.mxu0 %v885_v2  ;;  %161 = vmatpush1.bf16.msra.mxu1 %v885_v2  ;;  %v919_v7 = vld [vmem:[%s1161_s1 + $0x34] ss:$8 sps:$4 sm:$0xff]   ;;  %v926_v8 = vld [vmem:[%s1161_s1 + $0x30] ss:$8 sps:$4 sm:$0xff]   ;;  %v32_v9 = vld [vmem:[%s1162_s0] sm:$0xff] }
   0x4   :  { %79 = vmatprep.subr.bf16.mxu0 %v891_v3  ;;  %162 = vmatprep.subr.bf16.mxu1 %v891_v3  ;;  %v951_v18 = vld [vmem:[%s1163_s2] ss:$0 sm:$0xff]  ;;  %v128_v19 = vrot.slane %v32_v9, 4  ;;  %v750_v32 = vld [vmem:[%s1162_s0 + $0x8] sm:$0xff]  ;;  %v755_v54 = vld [vmem:[%s1162_s0 + $0x10] sm:$0xff] }
   0x5   :  { %v211_v41 = vrot.slane %v750_v32, 4  ;;  %v294_v63 = vrot.slane %v755_v54, 4 }
   0x7   :  { %80 = vmatpush1.bf16.msra.mxu0 %v898_v4  ;;  %163 = vmatpush1.bf16.msra.mxu1 %v898_v4 }
   0x8   :  { %81 = vmatprep.subr.bf16.mxu0 %v905_v5  ;;  %164 = vmatprep.subr.bf16.mxu1 %v905_v5 }
   0xb   :  { %82 = vmatpush1.bf16.msra.mxu0 %v912_v6  ;;  %165 = vmatpush1.bf16.msra.mxu1 %v912_v6 }
   0xc   :  { %83 = vmatprep.subr.bf16.mxu0 %v919_v7  ;;  %166 = vmatprep.subr.bf16.mxu1 %v919_v7 }
   0xf   :  { %84 = vmatpush1.bf16.msra.mxu0 %v926_v8  ;;  %167 = vmatpush1.bf16.msra.mxu1 %v926_v8 }
  0x10   :  { %243 = vmatprep.subr.bf16.mxu0 %v878_v0  ;;  %326 = vmatprep.subr.bf16.mxu1 %v878_v0 }
  0x12   :  { %110 = vmatmul.mubr.bf16.vlgmr.msra.gmra.mrb[0].mxu0 %v847_v1 }
  0x13   :  { %244 = vmatpush1.bf16.msra.mxu0 %v885_v2  ;;  %275 = vmatprep.mubr.bf16.mxu0 %v847_v1 }
  0x14   :  { %245 = vmatprep.subr.bf16.mxu0 %v891_v3 }
  0x17   :  { %246 = vmatpush1.bf16.msra.mxu0 %v898_v4 }
  0x18   :  { %247 = vmatprep.subr.bf16.mxu0 %v905_v5 }
  0x1b   :  { %248 = vmatpush1.bf16.msra.mxu0 %v912_v6 }
  0x1c   :  { %249 = vmatprep.subr.bf16.mxu0 %v919_v7 }
  0x1f   :  { %250 = vmatpush1.bf16.msra.mxu0 %v926_v8 }
  0x20   :  { %409 = vmatprep.subr.bf16.mxu0 %v878_v0 }
  0xe5   :  { %v111_v10 = vpop.f32.mrb[0].mxu0 }
  0xe6   :  { %v118_v11 = vadd.f32 %v111_v10, %v32_v9  ;;  %v113_v12 = vpop.f32.mrb[1].mxu0 }
  0xe7   :  { %v115_v13 = vpop.f32.mrb[2].mxu0  ;;  %v125_v20 = vadd.f32 %v951_v18, %v113_v12 }
  0xe8   :  { %v748_v14 = vmul.f32 -1.442695, %v118_v11  ;;  %v116_v15 = vpop.f32.mrb[3].mxu0 }
  0xea   :  { %799 = vpow2.f32 %v748_v14 }
  0xf4   :  { %v800_v16 = vpop.eup %799 }
  0xf5   :  { %v122_v17 = vadd.f32 1.0, %v800_v16 }
  0xf7   :  { %801 = vrcp.f32 %v122_v17 }
 0x101   :  { %v802_v21 = vpop.eup %801 }
 0x102   :  { %v126_v22 = vmul.f32 %v802_v21, %v125_v20  ;;  %v132_v25 = vsub.f32 1.0, %v802_v21  ;;  %v138_v27 = vmul.f32 0.0, %v802_v21 }
 0x104   :  { %v130_v23 = vadd.f32 %v128_v19, %v126_v22  ;;  %v760_v22 = vld [vmem:[%s1162_s0 + $0x18] sm:$0xff] }
 0x106   :  { %803 = vtanh.f32 %v130_v23 }
 0x110   :  { %v804_v24 = vpop.eup %803 }
 0x111   :  { %134 = vrot.lane.b32.xlu0 %v804_v24, %s848_s8 }
 0x183   :  { %v135_v26 = vpop.permute.xlu0 %134 }
 0x184   :  { %v137_v28 = vmul.f32 %v135_v26, %v132_v25 }
 0x186   :  { %v955_v29 = vadd.f32 %v138_v27, %v137_v28 }
 0x188   :  { %v153_v30 = vpack.c.bf16 %v955_v29, %v955_v29 }
 0x18a   :  { %155 = vrot.lane.b32.xlu0 %v153_v30, %s848_s8 }
 0x1fc   :  { %v156_v31 = vpop.permute.xlu0 %155 }
 0x1fd   :  { %751 = vmatmul.mubr.msk.bf16.vlgmr.msra.gmra.mrb[0].mxu1 %vm73_vm0, %v156_v31 }
 0x1fe   :  { %327 = vmatpush1.bf16.msra.mxu1 %v885_v2  ;;  %358 = vmatprep.mubr.bf16.mxu1 %v847_v1 }
 0x1ff   :  { %328 = vmatprep.subr.bf16.mxu1 %v891_v3 }
 0x202   :  { %329 = vmatpush1.bf16.msra.mxu1 %v898_v4 }
 0x203   :  { %330 = vmatprep.subr.bf16.mxu1 %v905_v5 }
 0x206   :  { %331 = vmatpush1.bf16.msra.mxu1 %v912_v6 }
 0x207   :  { %332 = vmatprep.subr.bf16.mxu1 %v919_v7 }
 0x20a   :  { %333 = vmatpush1.bf16.msra.mxu1 %v926_v8 }
 0x20b   :  { %492 = vmatprep.subr.bf16.mxu1 %v878_v0 }
 0x2d0   :  { %v194_v33 = vpop.f32.mrb[0].mxu1 }
 0x2d1   :  { %v201_v34 = vadd.f32 %v750_v32, %v194_v33  ;;  %v196_v35 = vpop.f32.mrb[1].mxu1  ;;  %v377_v32 = vrot.slane %v760_v22, 4 }
 0x2d2   :  { %v198_v36 = vpop.f32.mrb[2].mxu1  ;;  %v208_v42 = vadd.f32 %v951_v18, %v196_v35 }
 0x2d3   :  { %v752_v37 = vmul.f32 -1.442695, %v201_v34  ;;  %v199_v38 = vpop.f32.mrb[3].mxu1 }
 0x2d5   :  { %805 = vpow2.f32 %v752_v37 }
 0x2df   :  { %v806_v39 = vpop.eup %805 }
 0x2e0   :  { %v205_v40 = vadd.f32 1.0, %v806_v39 }
 0x2e2   :  { %807 = vrcp.f32 %v205_v40 }
 0x2ec   :  { %v808_v43 = vpop.eup %807 }
 0x2ed   :  { %v209_v44 = vmul.f32 %v808_v43, %v208_v42  ;;  %v215_v47 = vsub.f32 1.0, %v808_v43  ;;  %v221_v49 = vmul.f32 %v808_v43, %v955_v29 }
 0x2ef   :  { %v213_v45 = vadd.f32 %v211_v41, %v209_v44  ;;  %v765_v44 = vld [vmem:[%s1162_s0 + $0x20] sm:$0xff] }
 0x2f1   :  { %809 = vtanh.f32 %v213_v45 }
 0x2fb   :  { %v810_v46 = vpop.eup %809 }
 0x2fc   :  { %217 = vrot.lane.b32.xlu1 %v810_v46, %s848_s8 }
 0x36e   :  { %v218_v48 = vpop.permute.xlu1 %217 }
 0x36f   :  { %v220_v50 = vmul.f32 %v218_v48, %v215_v47 }
 0x371   :  { %v976_v51 = vadd.f32 %v221_v49, %v220_v50 }
 0x373   :  { %v236_v52 = vpack.c.bf16 %v976_v51, %v976_v51 }
 0x375   :  { %238 = vrot.lane.b32.xlu1 %v236_v52, %s848_s8 }
 0x3e7   :  { %v239_v53 = vpop.permute.xlu1 %238 }
 0x3e8   :  { %756 = vmatmul.mubr.msk.bf16.vlgmr.msra.gmra.mrb[4].mxu0 %vm73_vm0, %v239_v53 }
 0x3e9   :  { %410 = vmatpush1.bf16.msra.mxu0 %v885_v2  ;;  %441 = vmatprep.mubr.bf16.mxu0 %v847_v1 }
 0x3ea   :  { %411 = vmatprep.subr.bf16.mxu0 %v891_v3 }
 0x3ed   :  { %412 = vmatpush1.bf16.msra.mxu0 %v898_v4 }
 0x3ee   :  { %413 = vmatprep.subr.bf16.mxu0 %v905_v5 }
 0x3f1   :  { %414 = vmatpush1.bf16.msra.mxu0 %v912_v6 }
 0x3f2   :  { %415 = vmatprep.subr.bf16.mxu0 %v919_v7 }
 0x3f5   :  { %416 = vmatpush1.bf16.msra.mxu0 %v926_v8 }
 0x3f6   :  { %575 = vmatprep.subr.bf16.mxu0 %v878_v0 }
 0x4bb   :  { %v277_v55 = vpop.f32.mrb[4].mxu0 }
 0x4bc   :  { %v284_v56 = vadd.f32 %v755_v54, %v277_v55  ;;  %v279_v57 = vpop.f32.mrb[5].mxu0  ;;  %v460_v54 = vrot.slane %v765_v44, 4 }
 0x4bd   :  { %v281_v58 = vpop.f32.mrb[6].mxu0  ;;  %v291_v9 = vadd.f32 %v951_v18, %v279_v57 }
 0x4be   :  { %v757_v59 = vmul.f32 -1.442695, %v284_v56  ;;  %v282_v60 = vpop.f32.mrb[7].mxu0 }
 0x4c0   :  { %811 = vpow2.f32 %v757_v59 }
 0x4ca   :  { %v812_v61 = vpop.eup %811 }
 0x4cb   :  { %v288_v62 = vadd.f32 1.0, %v812_v61 }
 0x4cd   :  { %813 = vrcp.f32 %v288_v62 }
 0x4d7   :  { %v814_v10 = vpop.eup %813 }
 0x4d8   :  { %v292_v11 = vmul.f32 %v814_v10, %v291_v9  ;;  %v298_v14 = vsub.f32 1.0, %v814_v10  ;;  %v304_v16 = vmul.f32 %v814_v10, %v976_v51 }
 0x4da   :  { %v296_v12 = vadd.f32 %v294_v63, %v292_v11 }
 0x4dc   :  { %815 = vtanh.f32 %v296_v12  ;;  %v770_v12 = vld [vmem:[%s1162_s0 + $0x28] sm:$0xff] }
 0x4e6   :  { %v816_v13 = vpop.eup %815 }
 0x4e7   :  { %300 = vrot.lane.b32.xlu0 %v816_v13, %s848_s8 }
 0x559   :  { %v301_v15 = vpop.permute.xlu0 %300 }
 0x55a   :  { %v303_v17 = vmul.f32 %v301_v15, %v298_v14 }
 0x55c   :  { %v997_v19 = vadd.f32 %v304_v16, %v303_v17 }
 0x55e   :  { %v319_v20 = vpack.c.bf16 %v997_v19, %v997_v19 }
 0x560   :  { %321 = vrot.lane.b32.xlu1 %v319_v20, %s848_s8 }
 0x5d2   :  { %v322_v21 = vpop.permute.xlu1 %321 }
 0x5d3   :  { %761 = vmatmul.mubr.msk.bf16.vlgmr.msra.gmra.mrb[4].mxu1 %vm73_vm0, %v322_v21 }
 0x5d4   :  { %493 = vmatpush1.bf16.msra.mxu1 %v885_v2  ;;  %524 = vmatprep.mubr.bf16.mxu1 %v847_v1 }
 0x5d5   :  { %494 = vmatprep.subr.bf16.mxu1 %v891_v3 }
 0x5d8   :  { %495 = vmatpush1.bf16.msra.mxu1 %v898_v4 }
 0x5d9   :  { %496 = vmatprep.subr.bf16.mxu1 %v905_v5 }
 0x5dc   :  { %497 = vmatpush1.bf16.msra.mxu1 %v912_v6 }
 0x5dd   :  { %498 = vmatprep.subr.bf16.mxu1 %v919_v7 }
 0x5e0   :  { %499 = vmatpush1.bf16.msra.mxu1 %v926_v8 }
 0x5e1   :  { %658 = vmatprep.subr.bf16.mxu1 %v878_v0 }
 0x6a6   :  { %v360_v23 = vpop.f32.mrb[4].mxu1 }
 0x6a7   :  { %v367_v24 = vadd.f32 %v760_v22, %v360_v23  ;;  %v362_v25 = vpop.f32.mrb[5].mxu1 }
 0x6a8   :  { %v364_v26 = vpop.f32.mrb[6].mxu1  ;;  %v374_v33 = vadd.f32 %v951_v18, %v362_v25 }
 0x6a9   :  { %v762_v27 = vmul.f32 -1.442695, %v367_v24  ;;  %v365_v28 = vpop.f32.mrb[7].mxu1 }
 0x6aa   :  { %v775_v28 = vld [vmem:[%s1162_s0 + $0x30] sm:$0xff] }
 0x6ab   :  { %817 = vpow2.f32 %v762_v27 }
 0x6b5   :  { %v818_v30 = vpop.eup %817 }
 0x6b6   :  { %v371_v31 = vadd.f32 1.0, %v818_v30 }
 0x6b8   :  { %819 = vrcp.f32 %v371_v31 }
 0x6c2   :  { %v820_v34 = vpop.eup %819 }
 0x6c3   :  { %v375_v35 = vmul.f32 %v820_v34, %v374_v33  ;;  %v381_v37 = vsub.f32 1.0, %v820_v34  ;;  %v387_v39 = vmul.f32 %v820_v34, %v997_v19 }
 0x6c5   :  { %v379_v0 = vadd.f32 %v377_v32, %v375_v35 }
 0x6c7   :  { %821 = vtanh.f32 %v379_v0 }
 0x6d1   :  { %v822_v36 = vpop.eup %821 }
 0x6d2   :  { %383 = vrot.lane.b32.xlu0 %v822_v36, %s848_s8 }
 0x744   :  { %v384_v38 = vpop.permute.xlu0 %383 }
 0x745   :  { %v386_v40 = vmul.f32 %v384_v38, %v381_v37  ;;  %v626_v37 = vrot.slane %v775_v28, 4 }
 0x747   :  { %v1018_v41 = vadd.f32 %v387_v39, %v386_v40 }
 0x749   :  { %v402_v42 = vpack.c.bf16 %v1018_v41, %v1018_v41 }
 0x74b   :  { %404 = vrot.lane.b32.xlu1 %v402_v42, %s848_s8 }
 0x7bd   :  { %v405_v43 = vpop.permute.xlu1 %404 }
 0x7be   :  { %766 = vmatmul.mubr.msk.bf16.vlgmr.msra.gmra.mrb[8].mxu0 %vm73_vm0, %v405_v43 }
 0x7bf   :  { %576 = vmatpush1.bf16.msra.mxu0 %v885_v2  ;;  %607 = vmatprep.mubr.bf16.mxu0 %v847_v1 }
 0x7c0   :  { %577 = vmatprep.subr.bf16.mxu0 %v891_v3 }
 0x7c3   :  { %578 = vmatpush1.bf16.msra.mxu0 %v898_v4 }
 0x7c4   :  { %579 = vmatprep.subr.bf16.mxu0 %v905_v5 }
 0x7c7   :  { %580 = vmatpush1.bf16.msra.mxu0 %v912_v6 }
 0x7c8   :  { %581 = vmatprep.subr.bf16.mxu0 %v919_v7 }
 0x7cb   :  { %582 = vmatpush1.bf16.msra.mxu0 %v926_v8 }
 0x891   :  { %v443_v45 = vpop.f32.mrb[8].mxu0 }
 0x892   :  { %v450_v46 = vadd.f32 %v765_v44, %v443_v45  ;;  %v445_v47 = vpop.f32.mrb[9].mxu0 }
 0x893   :  { %v447_v48 = vpop.f32.mrb[10].mxu0  ;;  %v457_v55 = vadd.f32 %v951_v18, %v445_v47 }
 0x894   :  { %v767_v49 = vmul.f32 -1.442695, %v450_v46  ;;  %v448_v50 = vpop.f32.mrb[11].mxu0 }
 0x896   :  { %823 = vpow2.f32 %v767_v49 }
 0x8a0   :  { %v824_v52 = vpop.eup %823 }
 0x8a1   :  { %v454_v53 = vadd.f32 1.0, %v824_v52 }
 0x8a3   :  { %825 = vrcp.f32 %v454_v53 }
 0x8ad   :  { %v826_v56 = vpop.eup %825 }
 0x8ae   :  { %v458_v57 = vmul.f32 %v826_v56, %v457_v55  ;;  %v464_v60 = vsub.f32 1.0, %v826_v56  ;;  %v470_v62 = vmul.f32 %v826_v56, %v1018_v41 }
 0x8b0   :  { %v462_v58 = vadd.f32 %v460_v54, %v458_v57 }
 0x8b2   :  { %827 = vtanh.f32 %v462_v58 }
 0x8bc   :  { %v828_v59 = vpop.eup %827 }
 0x8bd   :  { %466 = vrot.lane.b32.xlu0 %v828_v59, %s848_s8  ;;  %v780_v59 = vld [vmem:[%s1162_s0 + $0x38] sm:$0xff]  ;;  %s849_s0 = smov 32  }
 0x92f   :  { %v467_v61 = vpop.permute.xlu0 %466 }
 0x930   :  { %v469_v63 = vmul.f32 %v467_v61, %v464_v60 }
 0x932   :  { %v1038_v9 = vadd.f32 %v470_v62, %v469_v63 }
 0x934   :  { %v485_v10 = vpack.c.bf16 %v1038_v9, %v1038_v9 }
 0x936   :  { %487 = vrot.lane.b32.xlu1 %v485_v10, %s848_s8 }
 0x9a8   :  { %v488_v11 = vpop.permute.xlu1 %487 }
 0x9a9   :  { %771 = vmatmul.mubr.msk.bf16.vlgmr.msra.gmra.mrb[8].mxu1 %vm73_vm0, %v488_v11 }
 0x9aa   :  { %659 = vmatpush1.bf16.msra.mxu1 %v885_v2  ;;  %690 = vmatprep.mubr.bf16.mxu1 %v847_v1 }
 0x9ab   :  { %660 = vmatprep.subr.bf16.mxu1 %v891_v3 }
 0x9ae   :  { %661 = vmatpush1.bf16.msra.mxu1 %v898_v4 }
 0x9af   :  { %662 = vmatprep.subr.bf16.mxu1 %v905_v5  ;;  %v543_v5 = vrot.slane %v770_v12, 4 }
 0x9b2   :  { %663 = vmatpush1.bf16.msra.mxu1 %v912_v6 }
 0x9b3   :  { %664 = vmatprep.subr.bf16.mxu1 %v919_v7 }
 0x9b6   :  { %665 = vmatpush1.bf16.msra.mxu1 %v926_v8 }
 0xa7c   :  { %v526_v13 = vpop.f32.mrb[8].mxu1 }
 0xa7d   :  { %v533_v2 = vadd.f32 %v770_v12, %v526_v13  ;;  %v528_v14 = vpop.f32.mrb[9].mxu1 }
 0xa7e   :  { %v530_v1 = vpop.f32.mrb[10].mxu1  ;;  %v540_v6 = vadd.f32 %v951_v18, %v528_v14 }
 0xa7f   :  { %v772_v15 = vmul.f32 -1.442695, %v533_v2  ;;  %v531_v3 = vpop.f32.mrb[11].mxu1  ;;  %v709_v2 = vrot.slane %v780_v59, 4 }
 0xa81   :  { %829 = vpow2.f32 %v772_v15 }
 0xa8b   :  { %v830_v4 = vpop.eup %829 }
 0xa8c   :  { %v537_v16 = vadd.f32 1.0, %v830_v4 }
 0xa8e   :  { %831 = vrcp.f32 %v537_v16 }
 0xa98   :  { %v832_v7 = vpop.eup %831 }
 0xa99   :  { %v541_v17 = vmul.f32 %v832_v7, %v540_v6  ;;  %v547_v21 = vsub.f32 1.0, %v832_v7  ;;  %v553_v23 = vmul.f32 %v832_v7, %v1038_v9 }
 0xa9b   :  { %v545_v8 = vadd.f32 %v543_v5, %v541_v17 }
 0xa9d   :  { %833 = vtanh.f32 %v545_v8 }
 0xaa7   :  { %v834_v20 = vpop.eup %833 }
 0xaa8   :  { %549 = vrot.lane.b32.xlu0 %v834_v20, %s848_s8 }
 0xb1a   :  { %v550_v22 = vpop.permute.xlu0 %549 }
 0xb1b   :  { %v552_v24 = vmul.f32 %v550_v22, %v547_v21 }
 0xb1d   :  { %v1058_v25 = vadd.f32 %v553_v23, %v552_v24 }
 0xb1f   :  { %v568_v26 = vpack.c.bf16 %v1058_v25, %v1058_v25 }
 0xb21   :  { %570 = vrot.lane.b32.xlu1 %v568_v26, %s848_s8 }
 0xb93   :  { %v571_v27 = vpop.permute.xlu1 %570 }
 0xb94   :  { %776 = vmatmul.mubr.msk.bf16.vlgmr.msra.gmra.mrb[12].mxu0 %vm73_vm0, %v571_v27 }
 0xc67   :  { %v609_v30 = vpop.f32.mrb[12].mxu0 }
 0xc68   :  { %v616_v31 = vadd.f32 %v775_v28, %v609_v30  ;;  %v611_v32 = vpop.f32.mrb[13].mxu0 }
 0xc69   :  { %v613_v33 = vpop.f32.mrb[14].mxu0  ;;  %v623_v38 = vadd.f32 %v951_v18, %v611_v32 }
 0xc6a   :  { %v777_v34 = vmul.f32 -1.442695, %v616_v31  ;;  %v614_v35 = vpop.f32.mrb[15].mxu0 }
 0xc6c   :  { %835 = vpow2.f32 %v777_v34 }
 0xc76   :  { %v836_v0 = vpop.eup %835 }
 0xc77   :  { %v620_v36 = vadd.f32 1.0, %v836_v0 }
 0xc79   :  { %837 = vrcp.f32 %v620_v36 }
 0xc83   :  { %v838_v39 = vpop.eup %837 }
 0xc84   :  { %v624_v40 = vmul.f32 %v838_v39, %v623_v38  ;;  %v630_v44 = vsub.f32 1.0, %v838_v39  ;;  %v636_v46 = vmul.f32 %v838_v39, %v1058_v25 }
 0xc86   :  { %v628_v42 = vadd.f32 %v626_v37, %v624_v40 }
 0xc88   :  { %839 = vtanh.f32 %v628_v42 }
 0xc92   :  { %v840_v43 = vpop.eup %839 }
 0xc93   :  { %632 = vrot.lane.b32.xlu0 %v840_v43, %s848_s8 }
 0xd05   :  { %v633_v45 = vpop.permute.xlu0 %632 }
 0xd06   :  { %v635_v47 = vmul.f32 %v633_v45, %v630_v44 }
 0xd08   :  { %v637_v48 = vadd.f32 %v636_v46, %v635_v47 }
 0xd0a   :  { %v651_v49 = vpack.c.bf16 %v637_v48, %v637_v48 }
 0xd0c   :  { %653 = vrot.lane.b32.xlu1 %v651_v49, %s848_s8 }
 0xd10   :  { %141 = vrot.lane.b32.xlu1 %v955_v29, %s848_s8 }
 0xd14   :  { %224 = vrot.lane.b32.xlu1 %v976_v51, %s848_s8 }
 0xd18   :  { %307 = vrot.lane.b32.xlu1 %v997_v19, %s848_s8 }
 0xd1c   :  { %390 = vrot.lane.b32.xlu1 %v1018_v41, %s848_s8 }
 0xd20   :  { %473 = vrot.lane.b32.xlu1 %v1038_v9, %s848_s8 }
 0xd24   :  { %556 = vrot.lane.b32.xlu1 %v1058_v25, %s848_s8 }
 0xd28   :  { %639 = vrot.lane.b32.xlu1 %v637_v48, %s848_s8 }
 0xd7e   :  { %v654_v50 = vpop.permute.xlu1 %653 }
 0xd7f   :  { %781 = vmatmul.mubr.msk.bf16.vlgmr.msra.gmra.mrb[12].mxu1 %vm73_vm0, %v654_v50 }
 0xd82   :  { %v142_v52 = vpop.permute.xlu1 %141 }
 0xd83   :  { %145 = vst.msk [vmem:[%s1164_s3] sm:$0xf] %vm144_vm1, %v142_v52 }
 0xd86   :  { %v225_v53 = vpop.permute.xlu1 %224 }
 0xd87   :  { %753 = vst.msk [vmem:[%s1164_s3 + $0x4] sm:$0xf] %vm144_vm1, %v225_v53 }
 0xd8a   :  { %v308_v54 = vpop.permute.xlu1 %307 }
 0xd8b   :  { %758 = vst.msk [vmem:[%s1164_s3 + $0x8] sm:$0xf] %vm144_vm1, %v308_v54 }
 0xd8e   :  { %v391_v55 = vpop.permute.xlu1 %390 }
 0xd8f   :  { %763 = vst.msk [vmem:[%s1164_s3 + $0xc] sm:$0xf] %vm144_vm1, %v391_v55 }
 0xd92   :  { %v474_v56 = vpop.permute.xlu1 %473 }
 0xd93   :  { %768 = vst.msk [vmem:[%s1164_s3 + $0x10] sm:$0xf] %vm144_vm1, %v474_v56 }
 0xd96   :  { %v557_v57 = vpop.permute.xlu1 %556 }
 0xd97   :  { %773 = vst.msk [vmem:[%s1164_s3 + $0x14] sm:$0xf] %vm144_vm1, %v557_v57 }
 0xd9a   :  { %v640_v58 = vpop.permute.xlu1 %639 }
 0xd9b   :  { %778 = vst.msk [vmem:[%s1164_s3 + $0x18] sm:$0xf] %vm144_vm1, %v640_v58 }
 0xe52   :  { %v692_v60 = vpop.f32.mrb[12].mxu1 }
 0xe53   :  { %v699_v61 = vadd.f32 %v780_v59, %v692_v60  ;;  %v694_v62 = vpop.f32.mrb[13].mxu1 }
 0xe54   :  { %v696_v63 = vpop.f32.mrb[14].mxu1  ;;  %v706_v14 = vadd.f32 %v951_v18, %v694_v62 }
 0xe55   :  { %v782_v10 = vmul.f32 -1.442695, %v699_v61  ;;  %v697_v11 = vpop.f32.mrb[15].mxu1 }
 0xe57   :  { %841 = vpow2.f32 %v782_v10 }
 0xe61   :  { %v842_v12 = vpop.eup %841 }
 0xe62   :  { %v703_v13 = vadd.f32 1.0, %v842_v12 }
 0xe64   :  { %843 = vrcp.f32 %v703_v13 }
 0xe6e   :  { %v844_v1 = vpop.eup %843 }
 0xe6f   :  { %v707_v15 = vmul.f32 %v844_v1, %v706_v14  ;;  %v713_v18 = vsub.f32 1.0, %v844_v1  ;;  %v719_v5 = vmul.f32 %v844_v1, %v637_v48 }
 0xe71   :  { %v711_v3 = vadd.f32 %v709_v2, %v707_v15 }
 0xe73   :  { %845 = vtanh.f32 %v711_v3 }
 0xe7d   :  { %v846_v4 = vpop.eup %845 }
 0xe7e   :  { %715 = vrot.lane.b32.xlu0 %v846_v4, %s848_s8 }
 0xe82   :  { %146 = vrot.lane.b32.xlu0 %v955_v29, %s849_s0 }
 0xe86   :  { %229 = vrot.lane.b32.xlu0 %v976_v51, %s849_s0 }
 0xe8a   :  { %312 = vrot.lane.b32.xlu0 %v997_v19, %s849_s0 }
 0xe8e   :  { %395 = vrot.lane.b32.xlu0 %v1018_v41, %s849_s0 }
 0xe92   :  { %478 = vrot.lane.b32.xlu0 %v1038_v9, %s849_s0 }
 0xe96   :  { %561 = vrot.lane.b32.xlu0 %v1058_v25, %s849_s0 }
 0xe9a   :  { %644 = vrot.lane.b32.xlu0 %v637_v48, %s849_s0 }
 0xef0   :  { %v716_v16 = vpop.permute.xlu0 %715 }
 0xef1   :  { %v718_v6 = vmul.f32 %v716_v16, %v713_v18 }
 0xef3   :  { %v720_v7 = vadd.f32 %v719_v5, %v718_v6 }
 0xef4   :  { %v147_v17 = vpop.permute.xlu0 %146 }
 0xef5   :  { %749 = vst.msk [vmem:[%s1165_s4 + $0x1c] sm:$0xf] %vm144_vm1, %v147_v17  ;;  %727 = vrot.lane.b32.xlu0 %v720_v7, %s849_s0  ;;  %722 = vrot.lane.b32.xlu1 %v720_v7, %s848_s8 }
 0xef8   :  { %v230_v29 = vpop.permute.xlu0 %229 }
 0xef9   :  { %754 = vst.msk [vmem:[%s1165_s4 + $0x18] sm:$0xf] %vm144_vm1, %v230_v29 }
 0xefc   :  { %v313_v51 = vpop.permute.xlu0 %312 }
 0xefd   :  { %759 = vst.msk [vmem:[%s1165_s4 + $0x14] sm:$0xf] %vm144_vm1, %v313_v51 }
 0xf00   :  { %v396_v19 = vpop.permute.xlu0 %395 }
 0xf01   :  { %764 = vst.msk [vmem:[%s1165_s4 + $0x10] sm:$0xf] %vm144_vm1, %v396_v19 }
 0xf04   :  { %v479_v41 = vpop.permute.xlu0 %478 }
 0xf05   :  { %769 = vst.msk [vmem:[%s1165_s4 + $0xc] sm:$0xf] %vm144_vm1, %v479_v41 }
 0xf08   :  { %v562_v9 = vpop.permute.xlu0 %561 }
 0xf09   :  { %774 = vst.msk [vmem:[%s1165_s4 + $0x8] sm:$0xf] %vm144_vm1, %v562_v9 }
 0xf0c   :  { %v645_v8 = vpop.permute.xlu0 %644 }
 0xf0d   :  { %779 = vst.msk [vmem:[%s1165_s4 + $0x4] sm:$0xf] %vm144_vm1, %v645_v8 }
 0xf67   :  { %v723_v20 = vpop.permute.xlu1 %722  ;;  %v728_v21 = vpop.permute.xlu0 %727 }
 0xf68   :  { %783 = vst.msk [vmem:[%s1164_s3 + $0x1c] sm:$0xf] %vm144_vm1, %v723_v20  ;;  %730 = vst.msk [vmem:[%s1165_s4] sm:$0xf] %vm144_vm1, %v728_v21 }

// kernel: _lambda_.5
= control target key start
LH: loop header
LB: loop body
LE: loop exit
PB: predicated region body
PF: predicated region fallthrough
CT: control target
= control target key end

     0   :  { %v138_v0 = vlaneseq  ;;  %v1123_v2 = vmov 0.0   ;;  %vm82_vm0 = vcmask 523264   ;;  %vm1124_vm1 = vmmov 0   ;;  %s1397_s2 = inlined_call_operand.vmem [shape: bf16[64,64], index: 2, kind: input, shape index: {}]   ;;  %s1398_s0 = inlined_call_operand.vmem [shape: f32[4,8,64], index: 0, kind: input, shape index: {}]   ;;  %s1399_s1 = inlined_call_operand.vmem [shape: f32[4,8], index: 1, kind: input, shape index: {}]   ;;  %s1400_s3 = inlined_call_operand.vmem [shape: f32[1,64], index: 3, kind: input, shape index: {}]   ;;  %s1401_s9 = inlined_call_operand.vmem [shape: f32[4,8,8], index: 9, kind: output, shape index: {1}]   ;;  %s1402_s4 = inlined_call_operand.vmem [shape: bf16[64,32], index: 4, kind: input, shape index: {}]   ;;  %s1403_s6 = inlined_call_operand.vmem [shape: bf16[32,7], index: 6, kind: input, shape index: {}]   ;;  %s1404_s5 = inlined_call_operand.vmem [shape: f32[1,32], index: 5, kind: input, shape index: {}]   ;;  %s1405_s7 = inlined_call_operand.vmem [shape: f32[1,7], index: 7, kind: input, shape index: {}]   ;;  %s1406_s8 = inlined_call_operand.vmem [shape: f32[4,8,7], index: 8, kind: output, shape index: {0}]  }
   0x1   :  { %v1065_v1 = vld [vmem:[%s1397_s2] sm:$0xff]   ;;  %994 = vmatprep.subr.bf16.mxu1 %v1123_v2  ;;  %v1066_v3 = vld [vmem:[%s1397_s2 + $0x8] sm:$0xff]   ;;  %v1067_v6 = vld [vmem:[%s1397_s2 + $0x10] sm:$0xff]   ;;  %996 = vmatprep.mubr.msk.bf16.mxu1 %vm1124_vm1, %v1123_v2  ;;  %v1125_v51 = vmov 1966171168   ;;  %vm415_vm2 = vcmask 64512  }
   0x2   :  { %v1183_v4 = vshrl.u32 %v138_v0, 7  ;;  %982 = vmatprep.subr.bf16.mxu0 %v1065_v1  ;;  %v1192_v7 = vld [vmem:[%s1398_s0] sm:$0xff]  ;;  %v1197_v8 = vld [vmem:[%s1398_s0 + $0x8] sm:$0xff]  ;;  %v1068_v16 = vld [vmem:[%s1397_s2 + $0x18] sm:$0xff]   ;;  %v364_v52 = vunpack.c.l.s4 %v1125_v51  ;;  %vm495_vm3 = vcmask 1043456   ;;  %vm802_vm4 = vcmask 261120  }
   0x3   :  { %983 = vmatpush3.bf16.msra.mxu0 %v1065_v1  ;;  %v41_v11 = vpack.c.bf16 %v1197_v8, %v1192_v7  ;;  %v1208_v12 = vld [vmem:[%s1399_s1] sm:$0xf]  ;;  %v1223_v19 = vld [vmem:[%s1398_s0 + $0x10] sm:$0xff]  ;;  %v1228_v20 = vld [vmem:[%s1398_s0 + $0x18] sm:$0xff]  ;;  %vm858_vm5 = vcmask 56320  }
   0x4   :  { %v154_v5 = vsub.s32 2, %v1183_v4  ;;  %984 = vmatprep.subr.bf16.mxu0 %v1066_v3  ;;  %v1200_v9 = vsub.s32 0, %v1183_v4  ;;  %v161_v10 = vsub.s32 3, %v1183_v4  ;;  %v147_v13 = vsub.s32 1, %v1183_v4  ;;  %v923_v32 = vld [vmem:[%s1400_s3] ss:$0 sm:$0xff] }
   0x5   :  { %990 = vmatprep.mubr.msk.bf16.mxu0 %vm82_vm0, %v41_v11  ;;  %v42_v21 = vpack.c.bf16 %v1228_v20, %v1223_v19  ;;  %v365_v53 = vunpack.c.0.s8 %v364_v52 }
   0x6   :  { %v155_v14 = vrot.slane %v1208_v12, %v154_v5  ;;  %v141_v15 = vrot.slane %v1208_v12, %v1200_v9  ;;  %v162_v17 = vrot.slane %v1208_v12, %v161_v10  ;;  %v148_v18 = vrot.slane %v1208_v12, %v147_v13 }
   0x7   :  { %985 = vmatpush3.bf16.msra.mxu0 %v1066_v3  ;;  %v368_v54 = vsub.s32 %v365_v53, %v1183_v4 }
   0x8   :  { %986 = vmatprep.subr.bf16.mxu0 %v1067_v6  ;;  %157 = vbcast.lane.b32.xlu1 %v155_v14, 256 }
   0x9   :  { %143 = vbcast.lane.b32.xlu0 %v141_v15, 256  ;;  %v369_v55 = vrot.slane %v1208_v12, %v368_v54 }
   0xb   :  { %987 = vmatpush3.bf16.msra.mxu0 %v1067_v6  ;;  %v377_v56 = vrot.slane %v369_v55, %v368_v54  ;;  %v370_v60 = vcombine.high %v369_v55, %v369_v55 }
   0xc   :  { %988 = vmatprep.subr.bf16.mxu0 %v1068_v16  ;;  %164 = vbcast.lane.b32.xlu1 %v162_v17, 256 }
   0xd   :  { %150 = vbcast.lane.b32.xlu0 %v148_v18, 256  ;;  %v385_v57 = vcombine.high %v377_v56, %v377_v56  ;;  %v1271_v59 = vrot.slane %v377_v56, %v1200_v9  ;;  %v384_v5 = vrot.slane %v370_v60, %v368_v54 }
   0xf   :  { %989 = vmatpush3.bf16.msra.mxu0 %v1068_v16  ;;  %v1268_v58 = vrot.slane %v385_v57, %v1200_v9  ;;  %v1276_v12 = vrot.slane %v384_v5, %v1200_v9  ;;  %v386_v16 = vcombine.high %v384_v5, %v384_v5 }
  0x10   :  { %1006 = vmatprep.subr.bf16.mxu0 %v1123_v2 }
  0x12   :  { %991 = vmatmul.mubr.msk.bf16.vlgmr.msra.gmra.mrb[0].mxu0 %vm82_vm0, %v42_v21 }
  0x13   :  { %1008 = vmatprep.mubr.msk.bf16.mxu0 %vm1124_vm1, %v1123_v2 }
  0x7a   :  { %v158_v22 = vpop.permute.xlu1 %157 }
  0x7b   :  { %v168_v23 = vmul.f32 %v158_v22, %v1223_v19  ;;  %v144_v24 = vpop.permute.xlu0 %143  ;;  %v1280_v22 = vrot.slane %v386_v16, %v1200_v9 }
  0x7c   :  { %v166_v25 = vmul.f32 %v144_v24, %v1192_v7 }
  0x7d   :  { %v172_v26 = vpack.c.bf16 %v168_v23, %v168_v23 }
  0x7e   :  { %v170_v27 = vpack.c.bf16 %v166_v25, %v166_v25  ;;  %v165_v37 = vpop.permute.xlu1 %164 }
  0x7f   :  { %v274_v28 = vsel %vm82_vm0, %v172_v26, 0  ;;  %v151_v30 = vpop.permute.xlu0 %150  ;;  %v169_v44 = vmul.f32 %v165_v37, %v1228_v20 }
  0x80   :  { %v182_v29 = vsel %vm82_vm0, %v170_v27, 0  ;;  %1007 = vmatpush3.bf16.xpose.msra.mxu0 %v274_v28  ;;  %v167_v31 = vmul.f32 %v151_v30, %v1197_v8 }
  0x81   :  { %995 = vmatpush3.bf16.xpose.msra.mxu1 %v182_v29  ;;  %1018 = vmatprep.subr.bf16.mxu0 %v1123_v2  ;;  %v173_v46 = vpack.c.bf16 %v169_v44, %v169_v44 }
  0x82   :  { %1000 = vmatprep.subr.bf16.mxu1 %v1123_v2  ;;  %v171_v33 = vpack.c.bf16 %v167_v31, %v167_v31 }
  0x83   :  { %v320_v48 = vsel %vm82_vm0, %v173_v46, 0 }
  0x84   :  { %v228_v42 = vsel %vm82_vm0, %v171_v33, 0 }
  0xe5   :  { %v992_v34 = vpop.f32.mrb[0].mxu0 }
  0xe6   :  { %v132_v35 = vadd.f32 %v992_v34, %v923_v32  ;;  %v123_v36 = vpop.f32.mrb[1].mxu0 }
  0xe7   :  { %v124_v38 = vadd.f32 %v923_v32, %v123_v36  ;;  %v993_v39 = vpop.f32.mrb[2].mxu0 }
  0xe8   :  { %v176_v40 = vpack.c.bf16 %v132_v35, %v132_v35  ;;  %v126_v41 = vpop.f32.mrb[3].mxu0  ;;  %v135_v49 = vadd.f32 %v993_v39, %v923_v32 }
  0xe9   :  { %v174_v43 = vpack.c.bf16 %v124_v38, %v124_v38  ;;  %v127_v45 = vadd.f32 %v923_v32, %v126_v41 }
  0xea   :  { %1009 = vmatmul.mubr.msk.bf16.vlgmr.msra.gmra.mrb[4].mxu0 %vm82_vm0, %v176_v40  ;;  %v177_v50 = vpack.c.bf16 %v135_v49, %v135_v49 }
  0xeb   :  { %997 = vmatmul.mubr.msk.bf16.vlgmr.msra.gmra.mrb[0].mxu1 %vm82_vm0, %v174_v43  ;;  %1020 = vmatprep.mubr.msk.bf16.mxu0 %vm1124_vm1, %v1123_v2  ;;  %v175_v47 = vpack.c.bf16 %v127_v45, %v127_v45 }
  0xec   :  { %1001 = vmatpush3.bf16.xpose.msra.mxu1 %v228_v42  ;;  %1002 = vmatprep.mubr.msk.bf16.mxu1 %vm1124_vm1, %v1123_v2 }
  0xed   :  { %1012 = vmatprep.subr.bf16.mxu1 %v1123_v2 }
  0xf3   :  { %1003 = vmatmul.mubr.msk.bf16.vlgmr.msra.gmra.mrb[4].mxu1 %vm82_vm0, %v175_v47 }
  0xf4   :  { %1013 = vmatpush3.bf16.xpose.msra.mxu1 %v320_v48  ;;  %1014 = vmatprep.mubr.msk.bf16.mxu1 %vm1124_vm1, %v1123_v2 }
  0xf5   :  { %1024 = vmatprep.subr.bf16.mxu1 %v1123_v2 }
  0xfb   :  { %1015 = vmatmul.mubr.msk.bf16.vlgmr.msra.gmra.mrb[8].mxu1 %vm82_vm0, %v177_v50 }
  0xfc   :  { %1026 = vmatprep.mubr.msk.bf16.mxu1 %vm1124_vm1, %v1123_v2 }
 0x1bd   :  { %v310_v61 = vpop.f32.mrb[4].mxu0 }
 0x1be   :  { %v218_v62 = vpop.f32.mrb[0].mxu1  ;;  %v1010_v63 = vpop.f32.mrb[5].mxu0  ;;  %v409_v0 = vmul.f32 %v1268_v58, %v310_v61 }
 0x1bf   :  { %v407_v1 = vmul.f32 %v1271_v59, %v218_v62  ;;  %v998_v3 = vpop.f32.mrb[1].mxu1  ;;  %v313_v4 = vpop.f32.mrb[6].mxu0 }
 0x1c0   :  { %v221_v6 = vpop.f32.mrb[2].mxu1  ;;  %v1011_v10 = vpop.f32.mrb[7].mxu0 }
 0x1c1   :  { %1075 = vtanh.f32 %v407_v1  ;;  %v999_v11 = vpop.f32.mrb[3].mxu1 }
 0x1c2   :  { %1077 = vtanh.f32 %v409_v0 }
 0x1c6   :  { %v264_v13 = vpop.f32.mrb[4].mxu1 }
 0x1c7   :  { %v408_v14 = vmul.f32 %v1276_v12, %v264_v13  ;;  %v1004_v15 = vpop.f32.mrb[5].mxu1 }
 0x1c8   :  { %v267_v17 = vpop.f32.mrb[6].mxu1 }
 0x1c9   :  { %1079 = vtanh.f32 %v408_v14  ;;  %v1005_v18 = vpop.f32.mrb[7].mxu1 }
 0x1cb   :  { %v1076_v21 = vpop.eup %1075 }
 0x1cc   :  { %v416_v23 = vsel %vm415_vm2, %v1076_v21, -inf  ;;  %v1078_v24 = vpop.eup %1077 }
 0x1cd   :  { %417 = vmax.xlane.f32.xlu0 %v416_v23  ;;  %v422_v29 = vsel %vm415_vm2, %v1078_v24, -inf }
 0x1ce   :  { %v356_v25 = vpop.f32.mrb[8].mxu1 }
 0x1cf   :  { %v410_v26 = vmul.f32 %v1280_v22, %v356_v25  ;;  %v1016_v27 = vpop.f32.mrb[9].mxu1 }
 0x1d0   :  { %v359_v28 = vpop.f32.mrb[10].mxu1 }
 0x1d1   :  { %1081 = vtanh.f32 %v410_v26  ;;  %423 = vmax.xlane.f32.xlu0 %v422_v29  ;;  %v1017_v30 = vpop.f32.mrb[11].mxu1 }
 0x1d3   :  { %v1080_v31 = vpop.eup %1079 }
 0x1d4   :  { %v419_v32 = vsel %vm415_vm2, %v1080_v31, -inf }
 0x1d5   :  { %420 = vmax.xlane.f32.xlu1 %v419_v32 }
 0x1db   :  { %v1082_v9 = vpop.eup %1081 }
 0x1dc   :  { %v425_v33 = vsel %vm415_vm2, %v1082_v9, -inf }
 0x1dd   :  { %426 = vmax.xlane.f32.xlu0 %v425_v33 }
 0x25a   :  { %v418_v34 = vpop.xlane.xlu0 %417 }
 0x25b   :  { %v428_v35 = vsub.f32 %v1076_v21, %v418_v34 }
 0x25d   :  { %v432_v36 = vmul.f32 1.442695, %v428_v35  ;;  %v1069_v35 = vld [vmem:[%s1402_s4] sm:$0xff]  }
 0x25e   :  { %v424_v37 = vpop.xlane.xlu0 %423 }
 0x25f   :  { %1083 = vpow2.f32 %v432_v36  ;;  %v430_v38 = vsub.f32 %v1078_v24, %v424_v37  ;;  %v1070_v36 = vld [vmem:[%s1402_s4 + $0x8] sm:$0xff]   ;;  %v1072_v37 = vld [vmem:[%s1402_s4 + $0x18] sm:$0xff]  }
 0x261   :  { %v436_v39 = vmul.f32 1.442695, %v430_v38 }
 0x262   :  { %v421_v40 = vpop.xlane.xlu1 %420 }
 0x263   :  { %1085 = vpow2.f32 %v436_v39  ;;  %v429_v41 = vsub.f32 %v1080_v31, %v421_v40 }
 0x265   :  { %v434_v42 = vmul.f32 1.442695, %v429_v41 }
 0x267   :  { %1087 = vpow2.f32 %v434_v42 }
 0x269   :  { %v1084_v43 = vpop.eup %1083 }
 0x26a   :  { %v427_v44 = vpop.xlane.xlu0 %426  ;;  %v440_v45 = vsel %vm415_vm2, %v1084_v43, 0.0 }
 0x26b   :  { %v431_v46 = vsub.f32 %v1082_v9, %v427_v44  ;;  %441 = vadd.xlane.f32.xlu1 %v440_v45 }
 0x26d   :  { %v1086_v47 = vpop.eup %1085  ;;  %v438_v48 = vmul.f32 1.442695, %v431_v46 }
 0x26e   :  { %v446_v49 = vsel %vm415_vm2, %v1086_v47, 0.0 }
 0x26f   :  { %1089 = vpow2.f32 %v438_v48  ;;  %447 = vadd.xlane.f32.xlu1 %v446_v49 }
 0x271   :  { %v1088_v50 = vpop.eup %1087 }
 0x272   :  { %v443_v51 = vsel %vm415_vm2, %v1088_v50, 0.0 }
 0x273   :  { %444 = vadd.xlane.f32.xlu0 %v443_v51 }
 0x279   :  { %v1090_v52 = vpop.eup %1089 }
 0x27a   :  { %v449_v53 = vsel %vm415_vm2, %v1090_v52, 0.0 }
 0x27b   :  { %450 = vadd.xlane.f32.xlu0 %v449_v53 }
 0x2f8   :  { %v442_v54 = vpop.xlane.xlu1 %441 }
 0x2f9   :  { %1091 = vrcp.f32 %v442_v54 }
 0x2fc   :  { %v448_v55 = vpop.xlane.xlu1 %447 }
 0x2fd   :  { %1093 = vrcp.f32 %v448_v55 }
 0x300   :  { %v445_v56 = vpop.xlane.xlu0 %444 }
 0x301   :  { %1095 = vrcp.f32 %v445_v56  ;;  %v1073_v56 = vld [vmem:[%s1403_s6] sm:$0xff]  }
 0x303   :  { %v1092_v57 = vpop.eup %1091 }
 0x304   :  { %v456_v60 = vmul.f32 %v1092_v57, %v1084_v43  ;;  %v1074_v57 = vld [vmem:[%s1403_s6 + $0x8] sm:$0xff]  }
 0x306   :  { %v460_v61 = vmul.f32 %v456_v60, %v1271_v59  ;;  %v938_v60 = vld [vmem:[%s1404_s5] ss:$0 sm:$0xff] }
 0x307   :  { %v1094_v62 = vpop.eup %1093 }
 0x308   :  { %v451_v63 = vpop.xlane.xlu0 %450  ;;  %v464_v0 = vsel %vm415_vm2, %v460_v61, 0.0  ;;  %v458_v1 = vmul.f32 %v1094_v62, %v1086_v47 }
 0x309   :  { %1097 = vrcp.f32 %v451_v63  ;;  %465 = vadd.xlane.f32.xlu1 %v464_v0 }
 0x30a   :  { %v462_v3 = vmul.f32 %v458_v1, %v1268_v58  ;;  %v37_v58 = vpack.c.bf16 %v1192_v7, %v1192_v7  ;;  %v39_v7 = vpack.c.bf16 %v1223_v19, %v1223_v19  ;;  %v40_v19 = vpack.c.bf16 %v1228_v20, %v1228_v20 }
 0x30b   :  { %v1096_v4 = vpop.eup %1095 }
 0x30c   :  { %v470_v5 = vsel %vm415_vm2, %v462_v3, 0.0  ;;  %v457_v6 = vmul.f32 %v1096_v4, %v1088_v50  ;;  %v497_v16 = vsel %vm495_vm3, %v37_v58, 0  ;;  %v589_v25 = vsel %vm495_vm3, %v39_v7, 0 }
 0x30d   :  { %471 = vadd.xlane.f32.xlu1 %v470_v5  ;;  %1019 = vmatpush3.bf16.msra.mxu0 %v497_v16  ;;  %v635_v9 = vsel %vm495_vm3, %v40_v19, 0 }
 0x30e   :  { %v461_v10 = vmul.f32 %v457_v6, %v1276_v12  ;;  %1030 = vmatprep.subr.bf16.mxu0 %v1123_v2  ;;  %v38_v12 = vpack.c.bf16 %v1197_v8, %v1197_v8 }
 0x310   :  { %v467_v11 = vsel %vm415_vm2, %v461_v10, 0.0  ;;  %v543_v17 = vsel %vm495_vm3, %v38_v12, 0 }
 0x311   :  { %468 = vadd.xlane.f32.xlu0 %v467_v11  ;;  %1025 = vmatpush3.bf16.msra.mxu1 %v543_v17 }
 0x312   :  { %1036 = vmatprep.subr.bf16.mxu1 %v1123_v2 }
 0x313   :  { %v1098_v59 = vpop.eup %1097 }
 0x314   :  { %v459_v13 = vmul.f32 %v1098_v59, %v1090_v52 }
 0x316   :  { %v463_v14 = vmul.f32 %v459_v13, %v1280_v22 }
 0x318   :  { %v473_v15 = vsel %vm415_vm2, %v463_v14, 0.0 }
 0x319   :  { %474 = vadd.xlane.f32.xlu0 %v473_v15  ;;  %v945_v15 = vld [vmem:[%s1405_s7] ss:$0 sm:$0xff] }
 0x396   :  { %v466_v18 = vpop.xlane.xlu1 %465 }
 0x397   :  { %1099 = vrcp.f32 %v466_v18 }
 0x39a   :  { %v472_v21 = vpop.xlane.xlu1 %471 }
 0x39b   :  { %1101 = vrcp.f32 %v472_v21 }
 0x39e   :  { %v469_v22 = vpop.xlane.xlu0 %468 }
 0x39f   :  { %1103 = vrcp.f32 %v469_v22 }
 0x3a1   :  { %v1100_v23 = vpop.eup %1099 }
 0x3a2   :  { %v480_v24 = vmul.f32 %v1100_v23, %v460_v61 }
 0x3a4   :  { %484 = vst.msk [vmem:[%s1401_s9] sm:$0xff] %vm415_vm2, %v480_v24  ;;  %v488_v8 = vpack.c.bf16 %v480_v24, %v480_v24 }
 0x3a5   :  { %v1102_v26 = vpop.eup %1101 }
 0x3a6   :  { %v482_v27 = vmul.f32 %v1102_v26, %v462_v3  ;;  %v475_v28 = vpop.xlane.xlu0 %474  ;;  %1021 = vmatmul.mubr.msk.bf16.vlgmr.msra.gmra.mrb[8].mxu0 %vm415_vm2, %v488_v8 }
 0x3a7   :  { %1105 = vrcp.f32 %v475_v28  ;;  %1031 = vmatpush3.bf16.msra.mxu0 %v589_v25  ;;  %1032 = vmatprep.mubr.msk.bf16.mxu0 %vm1124_vm1, %v1123_v2 }
 0x3a8   :  { %486 = vst.msk [vmem:[%s1401_s9 + $0x10] sm:$0xff] %vm415_vm2, %v482_v27  ;;  %v490_v32 = vpack.c.bf16 %v482_v27, %v482_v27  ;;  %1042 = vmatprep.subr.bf16.mxu0 %v1069_v35 }
 0x3a9   :  { %v1104_v29 = vpop.eup %1103 }
 0x3aa   :  { %v481_v30 = vmul.f32 %v1104_v29, %v461_v10 }
 0x3ac   :  { %485 = vst.msk [vmem:[%s1401_s9 + $0x8] sm:$0xff] %vm415_vm2, %v481_v30  ;;  %v489_v31 = vpack.c.bf16 %v481_v30, %v481_v30 }
 0x3ae   :  { %1027 = vmatmul.mubr.msk.bf16.vlgmr.msra.gmra.mrb[12].mxu1 %vm415_vm2, %v489_v31  ;;  %1033 = vmatmul.mubr.msk.bf16.vlgmr.msra.gmra.mrb[12].mxu0 %vm415_vm2, %v490_v32 }
 0x3af   :  { %1037 = vmatpush3.bf16.msra.mxu1 %v635_v9  ;;  %1038 = vmatprep.mubr.msk.bf16.mxu1 %vm1124_vm1, %v1123_v2  ;;  %v1071_v2 = vld [vmem:[%s1402_s4 + $0x10] sm:$0xff]  }
 0x3b0   :  { %1043 = vmatpush3.bf16.msra.mxu0 %v1069_v35  ;;  %1054 = vmatprep.subr.bf16.mxu1 %v1073_v56 }
 0x3b1   :  { %v1106_v20 = vpop.eup %1105  ;;  %1044 = vmatprep.subr.bf16.mxu0 %v1070_v36 }
 0x3b2   :  { %v483_v33 = vmul.f32 %v1106_v20, %v463_v14 }
 0x3b4   :  { %487 = vst.msk [vmem:[%s1401_s9 + $0x18] sm:$0xff] %vm415_vm2, %v483_v33  ;;  %v491_v34 = vpack.c.bf16 %v483_v33, %v483_v33  ;;  %1045 = vmatpush3.bf16.msra.mxu0 %v1070_v36 }
 0x3b5   :  { %1046 = vmatprep.subr.bf16.mxu0 %v1071_v2 }
 0x3b6   :  { %1039 = vmatmul.mubr.msk.bf16.vlgmr.msra.gmra.mrb[16].mxu1 %vm415_vm2, %v491_v34 }
 0x3b7   :  { %1055 = vmatpush3.bf16.msra.mxu1 %v1073_v56 }
 0x3b8   :  { %1047 = vmatpush3.bf16.msra.mxu0 %v1071_v2  ;;  %1056 = vmatprep.subr.bf16.mxu1 %v1074_v57 }
 0x3b9   :  { %1048 = vmatprep.subr.bf16.mxu0 %v1072_v37 }
 0x3bb   :  { %1057 = vmatpush3.bf16.msra.mxu1 %v1074_v57 }
 0x3bc   :  { %1049 = vmatpush3.bf16.msra.mxu0 %v1072_v37 }
 0x479   :  { %v533_v38 = vpop.f32.mrb[8].mxu0 }
 0x47a   :  { %v1022_v39 = vpop.f32.mrb[9].mxu0 }
 0x47b   :  { %v536_v40 = vpop.f32.mrb[10].mxu0 }
 0x47c   :  { %v1023_v41 = vpop.f32.mrb[11].mxu0 }
 0x481   :  { %v579_v42 = vpop.f32.mrb[12].mxu1  ;;  %v625_v43 = vpop.f32.mrb[12].mxu0 }
 0x482   :  { %v677_v44 = vpack.c.bf16 %v579_v42, %v533_v38  ;;  %v1028_v45 = vpop.f32.mrb[13].mxu1  ;;  %v1034_v46 = vpop.f32.mrb[13].mxu0 }
 0x483   :  { %v582_v47 = vpop.f32.mrb[14].mxu1  ;;  %v628_v48 = vpop.f32.mrb[14].mxu0 }
 0x484   :  { %v1029_v49 = vpop.f32.mrb[15].mxu1  ;;  %v1035_v50 = vpop.f32.mrb[15].mxu0  ;;  %1050 = vmatprep.mubr.msk.bf16.mxu0 %vm82_vm0, %v677_v44 }
 0x489   :  { %v671_v51 = vpop.f32.mrb[16].mxu1 }
 0x48a   :  { %v678_v52 = vpack.c.bf16 %v671_v51, %v625_v43  ;;  %v1040_v53 = vpop.f32.mrb[17].mxu1 }
 0x48b   :  { %v674_v54 = vpop.f32.mrb[18].mxu1 }
 0x48c   :  { %v1041_v55 = vpop.f32.mrb[19].mxu1  ;;  %1051 = vmatmul.mubr.msk.bf16.vlgmr.msra.gmra.mrb[16].mxu0 %vm82_vm0, %v678_v52 }
 0x55f   :  { %v1052_v61 = vpop.f32.mrb[16].mxu0 }
 0x560   :  { %v767_v62 = vadd.f32 %v1052_v61, %v938_v60  ;;  %v758_v63 = vpop.f32.mrb[17].mxu0 }
 0x561   :  { %v759_v0 = vadd.f32 %v938_v60, %v758_v63  ;;  %v1053_v1 = vpop.f32.mrb[18].mxu0 }
 0x562   :  { %v770_v3 = vadd.f32 %v1053_v1, %v938_v60  ;;  %v761_v4 = vpop.f32.mrb[19].mxu0  ;;  %v775_v6 = vmax.f32 %v767_v62, 0.0 }
 0x563   :  { %v762_v5 = vadd.f32 %v938_v60, %v761_v4  ;;  %v773_v11 = vmax.f32 %v759_v0, 0.0 }
 0x564   :  { %v776_v10 = vmax.f32 %v770_v3, 0.0 }
 0x565   :  { %v774_v59 = vmax.f32 %v762_v5, 0.0 }
 0x566   :  { %v778_v13 = vpack.c.bf16 %v776_v10, %v775_v6 }
 0x567   :  { %v777_v14 = vpack.c.bf16 %v774_v59, %v773_v11 }
 0x569   :  { %1058 = vmatprep.mubr.msk.bf16.mxu1 %vm802_vm4, %v777_v14 }
 0x56a   :  { %1059 = vmatmul.mubr.msk.bf16.vlgmr.msra.gmra.mrb[20].mxu1 %vm802_vm4, %v778_v13 }
 0x63d   :  { %v1060_v58 = vpop.f32.mrb[20].mxu1 }
 0x63e   :  { %v843_v16 = vpop.f32.mrb[21].mxu1  ;;  %v1363_v21 = vadd.f32 %v1060_v58, %v945_v15 }
 0x63f   :  { %v844_v12 = vadd.f32 %v945_v15, %v843_v16  ;;  %v1061_v17 = vpop.f32.mrb[22].mxu1 }
 0x640   :  { %v846_v18 = vpop.f32.mrb[23].mxu1  ;;  %v1366_v23 = vadd.f32 %v1061_v17, %v945_v15  ;;  %v865_v8 = vsel %vm858_vm5, %v1363_v21, -inf }
 0x641   :  { %v847_v22 = vadd.f32 %v945_v15, %v846_v18  ;;  %v859_v7 = vsel %vm858_vm5, %v844_v12, -inf }
 0x642   :  { %860 = vmax.xlane.f32.xlu1 %v859_v7  ;;  %v868_v25 = vsel %vm858_vm5, %v1366_v23, -inf }
 0x643   :  { %v862_v24 = vsel %vm858_vm5, %v847_v22, -inf }
 0x644   :  { %863 = vmax.xlane.f32.xlu0 %v862_v24 }
 0x646   :  { %866 = vmax.xlane.f32.xlu1 %v865_v8 }
 0x648   :  { %869 = vmax.xlane.f32.xlu0 %v868_v25 }
 0x6cf   :  { %v861_v26 = vpop.xlane.xlu1 %860 }
 0x6d0   :  { %v871_v27 = vsub.f32 %v844_v12, %v861_v26 }
 0x6d1   :  { %v864_v28 = vpop.xlane.xlu0 %863 }
 0x6d2   :  { %v875_v19 = vmul.f32 1.442695, %v871_v27  ;;  %v872_v29 = vsub.f32 %v847_v22, %v864_v28 }
 0x6d3   :  { %v867_v30 = vpop.xlane.xlu1 %866 }
 0x6d4   :  { %1107 = vpow2.f32 %v875_v19  ;;  %v877_v31 = vmul.f32 1.442695, %v872_v29  ;;  %v873_v32 = vsub.f32 %v1363_v21, %v867_v30 }
 0x6d5   :  { %v870_v9 = vpop.xlane.xlu0 %869 }
 0x6d6   :  { %1109 = vpow2.f32 %v877_v31  ;;  %v879_v20 = vmul.f32 1.442695, %v873_v32  ;;  %v874_v33 = vsub.f32 %v1366_v23, %v870_v9 }
 0x6d8   :  { %1111 = vpow2.f32 %v879_v20  ;;  %v881_v34 = vmul.f32 1.442695, %v874_v33 }
 0x6da   :  { %1113 = vpow2.f32 %v881_v34 }
 0x6de   :  { %v1108_v35 = vpop.eup %1107 }
 0x6df   :  { %v883_v36 = vsel %vm858_vm5, %v1108_v35, 0.0 }
 0x6e0   :  { %v1110_v2 = vpop.eup %1109  ;;  %884 = vadd.xlane.f32.xlu1 %v883_v36 }
 0x6e1   :  { %v886_v37 = vsel %vm858_vm5, %v1110_v2, 0.0 }
 0x6e2   :  { %v1112_v38 = vpop.eup %1111  ;;  %887 = vadd.xlane.f32.xlu0 %v886_v37 }
 0x6e3   :  { %v889_v39 = vsel %vm858_vm5, %v1112_v38, 0.0 }
 0x6e4   :  { %v1114_v40 = vpop.eup %1113  ;;  %890 = vadd.xlane.f32.xlu1 %v889_v39 }
 0x6e5   :  { %v892_v41 = vsel %vm858_vm5, %v1114_v40, 0.0 }
 0x6e6   :  { %893 = vadd.xlane.f32.xlu0 %v892_v41 }
 0x76d   :  { %v885_v42 = vpop.xlane.xlu1 %884 }
 0x76e   :  { %1115 = vlog2.f32 %v885_v42 }
 0x76f   :  { %v888_v43 = vpop.xlane.xlu0 %887 }
 0x770   :  { %1117 = vlog2.f32 %v888_v43 }
 0x771   :  { %v891_v44 = vpop.xlane.xlu1 %890 }
 0x772   :  { %1119 = vlog2.f32 %v891_v44 }
 0x773   :  { %v894_v45 = vpop.xlane.xlu0 %893 }
 0x774   :  { %1121 = vlog2.f32 %v894_v45 }
 0x778   :  { %v1116_v46 = vpop.eup %1115 }
 0x779   :  { %v896_v47 = vmul.f32 0.6931472, %v1116_v46 }
 0x77a   :  { %v1118_v48 = vpop.eup %1117 }
 0x77b   :  { %v903_v49 = vadd.f32 %v896_v47, %v861_v26  ;;  %v898_v50 = vmul.f32 0.6931472, %v1118_v48 }
 0x77c   :  { %v1120_v51 = vpop.eup %1119 }
 0x77d   :  { %v907_v52 = vsub.f32 %v844_v12, %v903_v49  ;;  %v904_v53 = vadd.f32 %v898_v50, %v864_v28  ;;  %v900_v54 = vmul.f32 0.6931472, %v1120_v51 }
 0x77e   :  { %v1122_v55 = vpop.eup %1121 }
 0x77f   :  { %911 = vst.msk [vmem:[%s1406_s8] sm:$0xff] %vm858_vm5, %v907_v52  ;;  %v908_v56 = vsub.f32 %v847_v22, %v904_v53  ;;  %v905_v57 = vadd.f32 %v900_v54, %v867_v30  ;;  %v902_v60 = vmul.f32 0.6931472, %v1122_v55 }
 0x781   :  { %912 = vst.msk [vmem:[%s1406_s8 + $0x8] sm:$0xff] %vm858_vm5, %v908_v56  ;;  %v909_v61 = vsub.f32 %v1363_v21, %v905_v57  ;;  %v906_v62 = vadd.f32 %v902_v60, %v870_v9 }
 0x783   :  { %913 = vst.msk [vmem:[%s1406_s8 + $0x10] sm:$0xff] %vm858_vm5, %v909_v61  ;;  %v910_v63 = vsub.f32 %v1366_v23, %v906_v62 }
 0x785   :  { %914 = vst.msk [vmem:[%s1406_s8 + $0x18] sm:$0xff] %vm858_vm5, %v910_v63 }

</bundles_post_ra>
